<compile_context>
chip_gen: v5e
topology: v5e:2x2
jax: 0.10.0
libtpu: 0.0.40
codegen_flags: <defaults>
</compile_context>

<pallas_src>
import functools

import jax
import jax.numpy as jnp
import numpy as np
from jax import lax
from jax.experimental import pallas as pl
from jax.experimental.pallas import tpu as pltpu

H_IN = 768
H1 = 512
H2 = 256
N_CLASSES = 6
N_PAD = 128  # classifier padded to one full lane register -> unmasked vst path


def _round_up(x, m):
    return (x + m - 1) // m * m


def _hw_budgets():
    """Per-generation VMEM budgets.  v7x TensorCores have 64 MiB VMEM
    (vs 128 MiB on v5e/v6e): use smaller streamed blocks and a tighter scoped
    limit there; on v5e/v6e spend VMEM on bigger tiles (the HBM-roofline
    plateau needs ~512+ streamed rows per step)."""
    vmem_cap = 128 << 20
    try:
        vmem_cap = int(pltpu.get_tpu_info().vmem_capacity_bytes)
    except Exception:
        pass
    small_vmem = vmem_cap <= (64 << 20)                       # v7x-like core
    block_budget = (8 << 20) if small_vmem else (16 << 20)    # per hidden buffer
    seq_tile_cap = 512 if small_vmem else 1024
    vmem_limit = (40 << 20) if small_vmem else (64 << 20)
    return block_budget, seq_tile_cap, vmem_limit, small_vmem


def _head_kernel(hidden_ref, invcnt_ref,
                 w1_ref, b1_ref, w2_ref, b2_ref, w3_ref, b3_ref,
                 out_ref, acc_ref, *, seq_len, seq_tile):
    s = pl.program_id(1)

    @pl.when(s == 0)
    def _():
        acc_ref[...] = jnp.zeros_like(acc_ref)

    # Stream hidden states over the sequence axis; accumulate in f32.
    tile = hidden_ref[...].astype(jnp.float32)
    if seq_len % seq_tile != 0:
        # Ragged last sequence block: the padded rows of the block are
        # undefined, so zero them before accumulating (cheap VPU ops, hidden
        # under the DMA).  This branch is not even traced when tiles divide S.
        rem = seq_len - s * seq_tile
        pos = lax.broadcasted_iota(jnp.int32, (1, seq_tile, 1), 1)
        tile = jnp.where(pos < rem, tile, 0.0)
    acc_ref[...] += jnp.sum(tile, axis=1)

    @pl.when(s == pl.num_programs(1) - 1)
    def _():
        # mean pool: PyTorch sums ALL positions, divides by sum(attention_mask)
        pooled = acc_ref[...] * invcnt_ref[...]                     # (Bt, 768)

        # F.normalize: x / max(||x||_2, 1e-12)
        sq = jnp.sum(pooled * pooled, axis=1, keepdims=True)
        pooled = pooled / jnp.maximum(jnp.sqrt(sq), 1e-12)

        # Epilogue matmuls run once per batch tile (~0.1% of streamed bytes);
        # bf16-stored weights are upcast here.  No MXU-shape tuning needed.
        x = jnp.dot(pooled, w1_ref[...].astype(jnp.float32),
                    preferred_element_type=jnp.float32) + b1_ref[...]
        x = jnp.maximum(x, 0.0)

        x = jnp.dot(x, w2_ref[...].astype(jnp.float32),
                    preferred_element_type=jnp.float32) + b2_ref[...]
        x = jnp.maximum(x, 0.0)

        # classifier (class dim padded to 128; padded lanes carry a -1e9 bias)
        logits = jnp.dot(x, w3_ref[...].astype(jnp.float32),
                         preferred_element_type=jnp.float32) + b3_ref[...]

        # softmax over the (padded) class dim; exp of padded lanes underflows to 0
        logits = logits - jnp.max(logits, axis=1, keepdims=True)
        e = jnp.exp(logits)
        out_ref[...] = e / jnp.sum(e, axis=1, keepdims=True)


def prepare_params(params):
    """One-time param prep (hoisted out of the call path): reshape biases,
    pad the classifier to 128 output lanes with a -1e9 sentinel bias, and
    store the (large) weight matrices in bf16 to halve their VMEM footprint."""
    w1, b1, w2, b2, w3, b3 = params
    w3p = jnp.zeros((H2, N_PAD), jnp.float32).at[:, :N_CLASSES].set(w3)
    b3p = jnp.full((1, N_PAD), -1e9, jnp.float32).at[:, :N_CLASSES].set(b3)
    return (w1.astype(jnp.bfloat16), b1.reshape(1, H1).astype(jnp.float32),
            w2.astype(jnp.bfloat16), b2.reshape(1, H2).astype(jnp.float32),
            w3p.astype(jnp.bfloat16), b3p)


def net_head(hidden, mask, prepared_params):
    """hidden: (B, S, 768) f32 or bf16, mask: (B, S) f32 -> softmax probs (B, 6)."""
    B, S, H = hidden.shape
    assert H == H_IN
    w1, b1, w2, b2, w3p, b3p = prepared_params

    block_budget, seq_tile_cap, vmem_limit, small_vmem = _hw_budgets()

    # ---- batch tile (multiple of 8, or the full batch dim when B <= 8) ----
    if B <= 8:
        b_tile = B                        # single tile; block == full batch dim
    else:
        b_tile = min(128, (B // 8) * 8)
        if small_vmem:
            # v7x has 2 TensorCores: keep >= 2 blocks on the "parallel" axis.
            b_tile = min(b_tile, max(8, _round_up((B + 1) // 2, 8)))

    # ---- sequence tile from the per-buffer byte budget ----
    bytes_el = jnp.dtype(hidden.dtype).itemsize
    row_bytes = b_tile * H_IN * bytes_el
    s_tile = max(8, (block_budget // row_bytes) // 8 * 8)
    s_tile = min(s_tile, seq_tile_cap, _round_up(S, 8))

    # No jnp.pad of the hidden tensor: ragged sequence blocks are masked in
    # the kernel, ragged batch blocks only ever touch rows that are sliced
    # off below (rows are independent through every per-row op).
    grid = (pl.cdiv(B, b_tile), pl.cdiv(S, s_tile))

    # Reduce the mask to a per-row reciprocal count in the wrapper so the
    # kernel only streams the hidden tensor.  (All-zero mask rows give inf,
    # matching the PyTorch reference's divide-by-zero behavior.)
    inv_count = (1.0 / jnp.sum(mask, axis=1, keepdims=True)).astype(jnp.float32)

    const = lambda b, s: (0, 0)   # weights/biases: resident across all steps
    kernel = functools.partial(_head_kernel, seq_len=S, seq_tile=s_tile)

    out = pl.pallas_call(
        kernel,
        out_shape=jax.ShapeDtypeStruct((B, N_PAD), jnp.float32),
        grid_spec=pltpu.PrefetchScalarGridSpec(
            num_scalar_prefetch=0,
            grid=grid,
            in_specs=[
                pl.BlockSpec((b_tile, s_tile, H_IN), lambda b, s: (b, s, 0)),
                pl.BlockSpec((b_tile, 1), lambda b, s: (b, 0)),
                pl.BlockSpec((H_IN, H1), const),
                pl.BlockSpec((1, H1), const),
                pl.BlockSpec((H1, H2), const),
                pl.BlockSpec((1, H2), const),
                pl.BlockSpec((H2, N_PAD), const),
                pl.BlockSpec((1, N_PAD), const),
            ],
            out_specs=pl.BlockSpec((b_tile, N_PAD), lambda b, s: (b, 0)),
            scratch_shapes=[pltpu.VMEM((b_tile, H_IN), jnp.float32)],
        ),
        compiler_params=pltpu.CompilerParams(
            dimension_semantics=("parallel", "arbitrary"),
            vmem_limit_bytes=vmem_limit,
        ),
    )(hidden, inv_count, w1, b1, w2, b2, w3p, b3p)

    return out[:B, :N_CLASSES]


def init_params(key):
    k1, k2, k3, k4, k5, k6 = jax.random.split(key, 6)
    # deterministic, small-magnitude params (synthetic; not a checkpoint load)
    w1 = jax.random.normal(k1, (H_IN, H1), jnp.float32) * 0.1
    b1 = jax.random.normal(k2, (H1,), jnp.float32) * 0.1
    w2 = jax.random.normal(k3, (H1, H2), jnp.float32) * 0.1
    b2 = jax.random.normal(k4, (H2,), jnp.float32) * 0.1
    w3 = jax.random.normal(k5, (H2, N_CLASSES), jnp.float32) * 0.1
    b3 = jax.random.normal(k6, (N_CLASSES,), jnp.float32) * 0.1
    return (w1, b1, w2, b2, w3, b3)


def reference_head(hidden, mask, prepared_params):
    """Pure-JAX reference using the same (bf16-stored) weights as the kernel."""
    w1, b1, w2, b2, w3p, b3p = prepared_params
    w1 = w1.astype(jnp.float32)
    w2 = w2.astype(jnp.float32)
    w3 = w3p[:, :N_CLASSES].astype(jnp.float32)
    b3 = b3p[:, :N_CLASSES]
    pooled = (jnp.sum(hidden.astype(jnp.float32), axis=1)
              / jnp.sum(mask, axis=1, keepdims=True))
    norm = jnp.sqrt(jnp.sum(pooled * pooled, axis=1, keepdims=True))
    pooled = pooled / jnp.maximum(norm, 1e-12)
    x = jnp.maximum(pooled @ w1 + b1, 0.0)
    x = jnp.maximum(x @ w2 + b2, 0.0)
    logits = x @ w3 + b3
    return jax.nn.softmax(logits, axis=1)


if __name__ == "__main__":
    B, S = 2, 8
    key = jax.random.PRNGKey(0)
    kh, kp = jax.random.split(key)

    # synthetic "BERT last hidden state" and attention mask
    hidden = jax.random.normal(kh, (B, S, H_IN), jnp.float32)
    mask = jnp.ones((B, S), jnp.float32).at[1, 6:].set(0.0)  # second seq padded

    params = init_params(kp)
    prepared = prepare_params(params)

    # f32 hidden stream
    probs = net_head(hidden, mask, prepared)
    probs = jax.block_until_ready(probs)
    ref = reference_head(hidden, mask, prepared)
    np.testing.assert_allclose(np.asarray(probs), np.asarray(ref),
                               rtol=1e-3, atol=1e-5)
    assert probs.shape == (B, N_CLASSES)

    # bf16 hidden stream (halves HBM traffic; kernel accumulates in f32)
    hidden_bf16 = hidden.astype(jnp.bfloat16)
    probs_bf16 = jax.block_until_ready(net_head(hidden_bf16, mask, prepared))
    ref_bf16 = reference_head(hidden_bf16, mask, prepared)
    np.testing.assert_allclose(np.asarray(probs_bf16), np.asarray(ref_bf16),
                               rtol=2e-2, atol=1e-3)

    print("KERNEL_OK")
</pallas_src>

<mosaic_0001>
module attributes {stable_mosaic.version = 11 : i64} {
  func.func @_head_kernel(%arg0: i32, %arg1: i32, %arg2: memref<2x8x768xf32, #tpu.memory_space<vmem>>, %arg3: memref<2x1xf32, #tpu.memory_space<vmem>>, %arg4: memref<768x512xbf16, #tpu.memory_space<vmem>>, %arg5: memref<1x512xf32, #tpu.memory_space<vmem>>, %arg6: memref<512x256xbf16, #tpu.memory_space<vmem>>, %arg7: memref<1x256xf32, #tpu.memory_space<vmem>>, %arg8: memref<256x128xbf16, #tpu.memory_space<vmem>>, %arg9: memref<1x128xf32, #tpu.memory_space<vmem>>, %arg10: memref<2x128xf32, #tpu.memory_space<vmem>>, %arg11: memref<2x768xf32, #tpu.memory_space<vmem>>) attributes {dimension_semantics = [#tpu.dimension_semantics<parallel>, #tpu.dimension_semantics<arbitrary>], iteration_bounds = array<i64: 1, 1>, scalar_prefetch = 0 : i64, scratch_operands = 1 : i64, tpu.core_type = #tpu.core_type<tc>, window_params = [{transform_indices = @transform_0, window_bounds = array<i64: 2, 8, 768>}, {transform_indices = @transform_1, window_bounds = array<i64: 2, 1>}, {pipeline_mode = #tpu.pipeline_mode<synchronous>, transform_indices = @transform_2, window_bounds = array<i64: 768, 512>}, {pipeline_mode = #tpu.pipeline_mode<synchronous>, transform_indices = @transform_3, window_bounds = array<i64: 1, 512>}, {pipeline_mode = #tpu.pipeline_mode<synchronous>, transform_indices = @transform_4, window_bounds = array<i64: 512, 256>}, {pipeline_mode = #tpu.pipeline_mode<synchronous>, transform_indices = @transform_5, window_bounds = array<i64: 1, 256>}, {pipeline_mode = #tpu.pipeline_mode<synchronous>, transform_indices = @transform_6, window_bounds = array<i64: 256, 128>}, {pipeline_mode = #tpu.pipeline_mode<synchronous>, transform_indices = @transform_7, window_bounds = array<i64: 1, 128>}, {transform_indices = @transform_8, window_bounds = array<i64: 2, 128>}]} {
    %c0_i32 = arith.constant 0 : i32
    %0 = arith.cmpi eq, %arg1, %c0_i32 : i32
    %1 = arith.extui %0 : i1 to i32
    %c0_i32_0 = arith.constant 0 : i32
    %2 = arith.cmpi ne, %1, %c0_i32_0 : i32
    scf.if %2 {
      %cst_9 = arith.constant 0.000000e+00 : f32
      %11 = vector.broadcast %cst_9 : f32 to vector<2x768xf32>
      %c0_10 = arith.constant 0 : index
      %c0_11 = arith.constant 0 : index
      %12 = vector.load %arg11[%c0_10, %c0_11] : memref<2x768xf32, #tpu.memory_space<vmem>>, vector<2x768xf32>
      tpu.vector_store %arg11[%c0_10, %c0_11], %11 {strides = array<i32>} : memref<2x768xf32, #tpu.memory_space<vmem>>, vector<2x768xf32>,
    } else {
    }
    %c0 = arith.constant 0 : index
    %c0_1 = arith.constant 0 : index
    %c0_2 = arith.constant 0 : index
    %3 = vector.load %arg2[%c0, %c0_1, %c0_2] : memref<2x8x768xf32, #tpu.memory_space<vmem>>, vector<2x8x768xf32>
    %c0_3 = arith.constant 0 : index
    %c0_4 = arith.constant 0 : index
    %4 = vector.load %arg11[%c0_3, %c0_4] : memref<2x768xf32, #tpu.memory_space<vmem>>, vector<2x768xf32>
    %cst = arith.constant dense<0.000000e+00> : vector<2x768xf32>
    %5 = vector.multi_reduction <add>, %3, %cst [1] : vector<2x8x768xf32> to vector<2x768xf32>
    %6 = arith.addf %4, %5 : vector<2x768xf32>
    %c0_5 = arith.constant 0 : index
    %c0_6 = arith.constant 0 : index
    %7 = vector.load %arg11[%c0_5, %c0_6] : memref<2x768xf32, #tpu.memory_space<vmem>>, vector<2x768xf32>
    tpu.vector_store %arg11[%c0_5, %c0_6], %6 {strides = array<i32>} : memref<2x768xf32, #tpu.memory_space<vmem>>, vector<2x768xf32>,
    %c0_i32_7 = arith.constant 0 : i32
    %8 = arith.cmpi eq, %arg1, %c0_i32_7 : i32
    %9 = arith.extui %8 : i1 to i32
    %c0_i32_8 = arith.constant 0 : i32
    %10 = arith.cmpi ne, %9, %c0_i32_8 : i32
    scf.if %10 {
      %c0_9 = arith.constant 0 : index
      %c0_10 = arith.constant 0 : index
      %11 = vector.load %arg11[%c0_9, %c0_10] : memref<2x768xf32, #tpu.memory_space<vmem>>, vector<2x768xf32>
      %c0_11 = arith.constant 0 : index
      %c0_12 = arith.constant 0 : index
      %12 = vector.load %arg3[%c0_11, %c0_12] : memref<2x1xf32, #tpu.memory_space<vmem>>, vector<2x1xf32>
      %13 = vector.broadcast %12 : vector<2x1xf32> to vector<2x768xf32>
      %14 = arith.mulf %11, %13 : vector<2x768xf32>
      %15 = arith.mulf %14, %14 : vector<2x768xf32>
      %cst_13 = arith.constant dense<0.000000e+00> : vector<2xf32>
      %16 = vector.multi_reduction <add>, %15, %cst_13 [1] : vector<2x768xf32> to vector<2xf32>
      %17 = vector.shape_cast %16 : vector<2xf32> to vector<2x1xf32>
      %18 = math.sqrt %17 : vector<2x1xf32>
      %cst_14 = arith.constant 9.99999996E-13 : f32
      %19 = vector.broadcast %cst_14 : f32 to vector<2x1xf32>
      %20 = arith.maximumf %18, %19 : vector<2x1xf32>
      %21 = vector.broadcast %20 : vector<2x1xf32> to vector<2x768xf32>
      %22 = arith.divf %14, %21 : vector<2x768xf32>
      %c0_15 = arith.constant 0 : index
      %c0_16 = arith.constant 0 : index
      %23 = vector.load %arg4[%c0_15, %c0_16] : memref<768x512xbf16, #tpu.memory_space<vmem>>, vector<768x512xbf16>
      %24 = arith.extf %23 : vector<768x512xbf16> to vector<768x512xf32>
      %cst_17 = arith.constant dense<0.000000e+00> : vector<2x512xf32>
      %25 = tpu.matmul %22, %24, %cst_17 {dimension_numbers = #tpu.dot_dimension_numbers<[1], [0], [0], [1], [0, 0, 1, 1], [], []>} : vector<2x768xf32>, vector<768x512xf32>, vector<2x512xf32> -> vector<2x512xf32>
      %c0_18 = arith.constant 0 : index
      %c0_19 = arith.constant 0 : index
      %26 = vector.load %arg5[%c0_18, %c0_19] : memref<1x512xf32, #tpu.memory_space<vmem>>, vector<1x512xf32>
      %27 = vector.broadcast %26 : vector<1x512xf32> to vector<2x512xf32>
      %28 = arith.addf %25, %27 : vector<2x512xf32>
      %cst_20 = arith.constant 0.000000e+00 : f32
      %29 = vector.broadcast %cst_20 : f32 to vector<2x512xf32>
      %30 = arith.maximumf %28, %29 : vector<2x512xf32>
      %c0_21 = arith.constant 0 : index
      %c0_22 = arith.constant 0 : index
      %31 = vector.load %arg6[%c0_21, %c0_22] : memref<512x256xbf16, #tpu.memory_space<vmem>>, vector<512x256xbf16>
      %32 = arith.extf %31 : vector<512x256xbf16> to vector<512x256xf32>
      %cst_23 = arith.constant dense<0.000000e+00> : vector<2x256xf32>
      %33 = tpu.matmul %30, %32, %cst_23 {dimension_numbers = #tpu.dot_dimension_numbers<[1], [0], [0], [1], [0, 0, 1, 1], [], []>} : vector<2x512xf32>, vector<512x256xf32>, vector<2x256xf32> -> vector<2x256xf32>
      %c0_24 = arith.constant 0 : index
      %c0_25 = arith.constant 0 : index
      %34 = vector.load %arg7[%c0_24, %c0_25] : memref<1x256xf32, #tpu.memory_space<vmem>>, vector<1x256xf32>
      %35 = vector.broadcast %34 : vector<1x256xf32> to vector<2x256xf32>
      %36 = arith.addf %33, %35 : vector<2x256xf32>
      %cst_26 = arith.constant 0.000000e+00 : f32
      %37 = vector.broadcast %cst_26 : f32 to vector<2x256xf32>
      %38 = arith.maximumf %36, %37 : vector<2x256xf32>
      %c0_27 = arith.constant 0 : index
      %c0_28 = arith.constant 0 : index
      %39 = vector.load %arg8[%c0_27, %c0_28] : memref<256x128xbf16, #tpu.memory_space<vmem>>, vector<256x128xbf16>
      %40 = arith.extf %39 : vector<256x128xbf16> to vector<256x128xf32>
      %cst_29 = arith.constant dense<0.000000e+00> : vector<2x128xf32>
      %41 = tpu.matmul %38, %40, %cst_29 {dimension_numbers = #tpu.dot_dimension_numbers<[1], [0], [0], [1], [0, 0, 1, 1], [], []>} : vector<2x256xf32>, vector<256x128xf32>, vector<2x128xf32> -> vector<2x128xf32>
      %c0_30 = arith.constant 0 : index
      %c0_31 = arith.constant 0 : index
      %42 = vector.load %arg9[%c0_30, %c0_31] : memref<1x128xf32, #tpu.memory_space<vmem>>, vector<1x128xf32>
      %43 = vector.broadcast %42 : vector<1x128xf32> to vector<2x128xf32>
      %44 = arith.addf %41, %43 : vector<2x128xf32>
      %cst_32 = arith.constant dense<0xFF800000> : vector<2xf32>
      %45 = vector.multi_reduction <maximumf>, %44, %cst_32 [1] : vector<2x128xf32> to vector<2xf32>
      %46 = vector.shape_cast %45 : vector<2xf32> to vector<2x1xf32>
      %47 = vector.broadcast %46 : vector<2x1xf32> to vector<2x128xf32>
      %48 = arith.subf %44, %47 : vector<2x128xf32>
      %49 = math.exp %48 : vector<2x128xf32>
      %cst_33 = arith.constant dense<0.000000e+00> : vector<2xf32>
      %50 = vector.multi_reduction <add>, %49, %cst_33 [1] : vector<2x128xf32> to vector<2xf32>
      %51 = vector.shape_cast %50 : vector<2xf32> to vector<2x1xf32>
      %52 = vector.broadcast %51 : vector<2x1xf32> to vector<2x128xf32>
      %53 = arith.divf %49, %52 : vector<2x128xf32>
      %c0_34 = arith.constant 0 : index
      %c0_35 = arith.constant 0 : index
      %54 = vector.load %arg10[%c0_34, %c0_35] : memref<2x128xf32, #tpu.memory_space<vmem>>, vector<2x128xf32>
      tpu.vector_store %arg10[%c0_34, %c0_35], %53 {strides = array<i32>} : memref<2x128xf32, #tpu.memory_space<vmem>>, vector<2x128xf32>,
    } else {
    }
    return
  }
  func.func @transform_0(%arg0: i32, %arg1: i32) -> (i32, i32, i32) {
    %c0_i32 = arith.constant 0 : i32
    %c0_i32_0 = arith.constant 0 : i32
    return %arg0, %arg1, %c0_i32 : i32, i32, i32
  }
  func.func @transform_1(%arg0: i32, %arg1: i32) -> (i32, i32) {
    %c0_i32 = arith.constant 0 : i32
    %c0_i32_0 = arith.constant 0 : i32
    return %arg0, %c0_i32 : i32, i32
  }
  func.func @transform_2(%arg0: i32, %arg1: i32) -> (i32, i32) {
    %c0_i32 = arith.constant 0 : i32
    %c0_i32_0 = arith.constant 0 : i32
    %c0_i32_1 = arith.constant 0 : i32
    return %c0_i32, %c0_i32_0 : i32, i32
  }
  func.func @transform_3(%arg0: i32, %arg1: i32) -> (i32, i32) {
    %c0_i32 = arith.constant 0 : i32
    %c0_i32_0 = arith.constant 0 : i32
    %c0_i32_1 = arith.constant 0 : i32
    return %c0_i32, %c0_i32_0 : i32, i32
  }
  func.func @transform_4(%arg0: i32, %arg1: i32) -> (i32, i32) {
    %c0_i32 = arith.constant 0 : i32
    %c0_i32_0 = arith.constant 0 : i32
    %c0_i32_1 = arith.constant 0 : i32
    return %c0_i32, %c0_i32_0 : i32, i32
  }
  func.func @transform_5(%arg0: i32, %arg1: i32) -> (i32, i32) {
    %c0_i32 = arith.constant 0 : i32
    %c0_i32_0 = arith.constant 0 : i32
    %c0_i32_1 = arith.constant 0 : i32
    return %c0_i32, %c0_i32_0 : i32, i32
  }
  func.func @transform_6(%arg0: i32, %arg1: i32) -> (i32, i32) {
    %c0_i32 = arith.constant 0 : i32
    %c0_i32_0 = arith.constant 0 : i32
    %c0_i32_1 = arith.constant 0 : i32
    return %c0_i32, %c0_i32_0 : i32, i32
  }
  func.func @transform_7(%arg0: i32, %arg1: i32) -> (i32, i32) {
    %c0_i32 = arith.constant 0 : i32
    %c0_i32_0 = arith.constant 0 : i32
    %c0_i32_1 = arith.constant 0 : i32
    return %c0_i32, %c0_i32_0 : i32, i32
  }
  func.func @transform_8(%arg0: i32, %arg1: i32) -> (i32, i32) {
    %c0_i32 = arith.constant 0 : i32
    %c0_i32_0 = arith.constant 0 : i32
    return %arg0, %c0_i32 : i32, i32
  }
}

</mosaic_0001>

<bundles_post_ra>
// kernel: tpu_custom_call.1
= control target key start
LH: loop header
LB: loop body
LE: loop exit
PB: predicated region body
PF: predicated region fallthrough
CT: control target
= control target key end

     0   :  { %13 = vsyncpa [#allocation4], 0  ;;  %s3368_s0 = inlined_call_operand.hbm [shape: f32[2,8,768], index: 0, kind: input, shape index: {}]   ;;  %s3369_s1 = inlined_call_operand.vmem [shape: f32[2,1], index: 1, kind: input, shape index: {}]   ;;  %s3370_s2 = inlined_call_operand.hbm [shape: bf16[768,512], index: 2, kind: input, shape index: {}]   ;;  %s3371_s3 = inlined_call_operand.vmem [shape: f32[1,512], index: 3, kind: input, shape index: {}]   ;;  %s3372_s4 = inlined_call_operand.hbm [shape: bf16[512,256], index: 4, kind: input, shape index: {}]   ;;  %s3373_s5 = inlined_call_operand.vmem [shape: f32[1,256], index: 5, kind: input, shape index: {}]   ;;  %s3374_s6 = inlined_call_operand.hbm [shape: bf16[256,128], index: 6, kind: input, shape index: {}]   ;;  %s3375_s7 = inlined_call_operand.vmem [shape: f32[1,128], index: 7, kind: input, shape index: {}]   ;;  %s3376_s8 = inlined_call_operand.hbm [shape: f32[2,128], index: 8, kind: output, shape index: {}]  }
   0x1   :  { %14 = vsyncpa [#allocation7], 0 }
   0x2   :  { %15 = vsyncpa [#allocation10], 0  ;;  %s36_s29 = sshll.u32 %s3370_s2, 4  ;;  %s37_s29 = int_to_ptr.hbm [resolvable:$true] %s36_s29 }
   0x3   :  { %16 = vsyncpa [#allocation5], 0  ;;  %s2162_s30 = smov [#allocation6]   ;;  %s21_s12 = sshll.u32 %s3368_s0, 4  ;;  %s22_s12 = int_to_ptr.hbm [resolvable:$true] %s21_s12 }
   0x4   :  { %s38_s9 = sshll.u32 %s2162_s30, 4  ;;  %s2163_s13 = smov 256   ;;  %s39_s9 = int_to_ptr.vmem [resolvable:$true] %s38_s9 }
   0x5   :  { %s2164_s14 = smov 16   ;;  %s2165_s15 = smov [#allocation3]  }
   0x6   :  { %44 = dma.hbm_to_vmem [thread:$0]  %s37_s29, 24576, %s39_s9, [#allocation7], %s2163_s13, %s2163_s13, %s2164_s14  }
   0x7   :  { %s23_s16 = sshll.u32 %s2165_s15, 4  ;;  %s2166_s17 = smov 768   ;;  %s24_s16 = int_to_ptr.vmem [resolvable:$true] %s23_s16 }
   0x8   :  { %s2167_s18 = smov 48   ;;  %s51_s20 = sshll.u32 %s3372_s4, 4  ;;  %s52_s20 = int_to_ptr.hbm [resolvable:$true] %s51_s20 }
   0x9   :  { %29 = dma.hbm_to_vmem [thread:$0]  %s22_s12, 1536, %s24_s16, [#allocation4], %s2166_s17, %s2166_s17, %s2167_s18  }
   0xa   :  { %s2168_s21 = smov [#allocation8]   ;;  %s66_s24 = sshll.u32 %s3374_s6, 4  ;;  %s67_s24 = int_to_ptr.hbm [resolvable:$true] %s66_s24 }
   0xb   :  { %s53_s22 = sshll.u32 %s2168_s21, 4  ;;  %s2169_s25 = smov 128   ;;  %s54_s22 = int_to_ptr.vmem [resolvable:$true] %s53_s22 }
   0xc   :  { %s2170_s26 = smov 8   ;;  %s2171_s27 = smov [#allocation9]  }
   0xd   :  { %59 = dma.hbm_to_vmem [thread:$0]  %s52_s20, 8192, %s54_s22, [#allocation7], %s2169_s25, %s2169_s25, %s2170_s26  }
   0xe   :  { %s68_s28 = sshll.u32 %s2171_s27, 4  ;;  %s2172_s29 = smov 64   ;;  %s69_s28 = int_to_ptr.vmem [resolvable:$true] %s68_s28 }
   0xf   :  { %s2173_s30 = smov 4  }
  0x10   :  { %74 = dma.hbm_to_vmem [thread:$0]  %s67_s24, 2048, %s69_s28, [#allocation10], %s2172_s29, %s2172_s29, %s2173_s30  }
  0x11   :  { %2154 = dma.done.wait [#allocation4], 1536  }
  0x12   :  { %2155 = vsyncadd [#allocation4], 4294965760 }
  0x13   :  { %2156 = dma.done.wait [#allocation7], 32768  }
  0x14   :  { %2157 = vsyncadd [#allocation7], 4294934528 }
  0x15   :  { %2158 = dma.done.wait [#allocation10], 2048  }
  0x16   :  { %2159 = vsyncadd [#allocation10], 4294965248  ;;  %v2174_v0 = vmov 0   ;;  %v2175_v1 = vmov 0.0   ;;  %v247_v2 = vld [vmem:[%s3369_s1] sm:$0x3] }
  0x17   :  { %2020 = vset.pattern.permute.xlu0 %v2174_v0  ;;  %98 = vst [vmem:[#allocation2 + $0x8] sm:$0xf] %v2175_v1  ;;  %v110_v3 = vld [vmem:[#allocation3 + $0x58] sm:$0xff]  ;;  %v104_v5 = vld [vmem:[#allocation3 + $0x28] sm:$0xff]  ;;  %v109_v6 = vld [vmem:[#allocation3 + $0x50] sm:$0xff]  ;;  %vm205_vm0 = vcmask 1041408  }
  0x18   :  { %250 = vperm.xlu0 %2020, %v247_v2   ;;  %v179_v4 = vrot.slane %v110_v3, 4  ;;  %v143_v7 = vrot.slane %v104_v5, 4  ;;  %v173_v8 = vrot.slane %v109_v6, 4  ;;  %v103_v10 = vld [vmem:[#allocation3 + $0x20] sm:$0xff]  ;;  %v106_v15 = vld [vmem:[#allocation3 + $0x38] sm:$0xff]  ;;  %v108_v17 = vld [vmem:[#allocation3 + $0x48] sm:$0xff] }
  0x19   :  { %v137_v11 = vrot.slane %v103_v10, 4  ;;  %v107_v16 = vld [vmem:[#allocation3 + $0x40] sm:$0xff]  ;;  %v155_v22 = vrot.slane %v106_v15, 4  ;;  %v167_v24 = vrot.slane %v108_v17, 4  ;;  %v100_v25 = vld [vmem:[#allocation3 + $0x8] sm:$0xff]  ;;  %v101_v26 = vld [vmem:[#allocation3 + $0x10] sm:$0xff] }
  0x1a   :  { %v180_v9 = vadd.f32 %v179_v4, %v110_v3  ;;  %v144_v12 = vadd.f32 %v143_v7, %v104_v5  ;;  %v174_v13 = vadd.f32 %v173_v8, %v109_v6  ;;  %v161_v23 = vrot.slane %v107_v16, 4  ;;  %v102_v27 = vld [vmem:[#allocation3 + $0x18] sm:$0xff]  ;;  %v105_v32 = vld [vmem:[#allocation3 + $0x30] sm:$0xff]  ;;  %v99_v37 = vld [vmem:[#allocation3] sm:$0xff]  ;;  %s1913_s15 = sshll.u32 %s3376_s8, 4  ;;  %s1914_s15 = int_to_ptr.hbm [resolvable:$true] %s1913_s15 }
  0x1b   :  { %v138_v18 = vadd.f32 %v137_v11, %v103_v10  ;;  %v119_v33 = vrot.slane %v100_v25, 4  ;;  %v125_v34 = vrot.slane %v101_v26, 4  ;;  %v131_v35 = vrot.slane %v102_v27, 4 }
  0x1c   :  { %v181_v14 = vrot.slane %v180_v9, 2  ;;  %v145_v19 = vrot.slane %v144_v12, 2  ;;  %v175_v20 = vrot.slane %v174_v13, 2  ;;  %v156_v36 = vadd.f32 %v155_v22, %v106_v15 }
  0x1d   :  { %v139_v28 = vrot.slane %v138_v18, 2  ;;  %v149_v40 = vrot.slane %v105_v32, 4  ;;  %v162_v41 = vadd.f32 %v161_v23, %v107_v16  ;;  %v113_v42 = vrot.slane %v99_v37, 4 }
  0x1e   :  { %v2238_v21 = vadd.f32 %v181_v14, %v180_v9  ;;  %v146_v29 = vadd.f32 %v145_v19, %v144_v12  ;;  %v176_v30 = vadd.f32 %v175_v20, %v174_v13  ;;  %v120_v43 = vadd.f32 %v119_v33, %v100_v25 }
  0x1f   :  { %v140_v38 = vadd.f32 %v139_v28, %v138_v18  ;;  %v126_v44 = vadd.f32 %v125_v34, %v101_v26  ;;  %v132_v45 = vadd.f32 %v131_v35, %v102_v27  ;;  %v150_v48 = vadd.f32 %v149_v40, %v105_v32 }
  0x20   :  { %v183_v31 = vrot.slane %v2238_v21, 1  ;;  %v147_v39 = vrot.slane %v146_v29, 1  ;;  %v157_v49 = vrot.slane %v156_v36, 2  ;;  %v114_v50 = vadd.f32 %v113_v42, %v99_v37 }
  0x21   :  { %v141_v46 = vrot.slane %v140_v38, 1  ;;  %v121_v51 = vrot.slane %v120_v43, 2  ;;  %v127_v52 = vrot.slane %v126_v44, 2  ;;  %v133_v53 = vrot.slane %v132_v45, 2 }
  0x22   :  { %v148_v47 = vadd.f32 %v147_v39, %v146_v29  ;;  %v151_v55 = vrot.slane %v150_v48, 2  ;;  %v158_v56 = vadd.f32 %v157_v49, %v156_v36  ;;  %v163_v57 = vrot.slane %v162_v41, 2  ;;  %v112_v39 = vld [vmem:[#allocation2 + $0x8] sm:$0xf] }
  0x23   :  { %v142_v54 = vadd.f32 %v141_v46, %v140_v38  ;;  %v115_v58 = vrot.slane %v114_v50, 2  ;;  %v122_v59 = vadd.f32 %v121_v51, %v120_v43  ;;  %v128_v60 = vadd.f32 %v127_v52, %v126_v44 }
  0x24   :  { %v134_v61 = vadd.f32 %v133_v53, %v132_v45  ;;  %v152_v62 = vadd.f32 %v151_v55, %v150_v48  ;;  %v159_v63 = vrot.slane %v158_v56, 1  ;;  %v164_v0 = vadd.f32 %v163_v57, %v162_v41  ;;  %v2256_v53 = vld [vmem:[#allocation6 + $0xf0] sm:$0xff] }
  0x25   :  { %v168_v1 = vadd.f32 %v167_v24, %v108_v17  ;;  %v116_v2 = vadd.f32 %v115_v58, %v114_v50  ;;  %v123_v3 = vrot.slane %v122_v59, 1  ;;  %v129_v4 = vrot.slane %v128_v60, 1  ;;  %v2260_v55 = vld [vmem:[#allocation6 + $0x2f0] sm:$0xff] }
  0x26   :  { %v135_v5 = vrot.slane %v134_v61, 1  ;;  %v153_v6 = vrot.slane %v152_v62, 1  ;;  %v160_v7 = vadd.f32 %v159_v63, %v158_v56  ;;  %v165_v8 = vrot.slane %v164_v0, 1 }
  0x27   :  { %v169_v9 = vrot.slane %v168_v1, 2  ;;  %v117_v10 = vrot.slane %v116_v2, 1  ;;  %v124_v11 = vadd.f32 %v123_v3, %v122_v59  ;;  %v130_v12 = vadd.f32 %v129_v4, %v128_v60  ;;  %v2266_v60 = vld [vmem:[#allocation6 + $0x3f0] sm:$0xff]  ;;  %v2275_v3 = vld [vmem:[#allocation6 + $0x2e0] sm:$0xff] }
  0x28   :  { %v136_v13 = vadd.f32 %v135_v5, %v134_v61  ;;  %v154_v14 = vadd.f32 %v153_v6, %v152_v62  ;;  %v166_v15 = vadd.f32 %v165_v8, %v164_v0  ;;  %v177_v18 = vrot.slane %v176_v30, 1  ;;  %v2268_v61 = vld [vmem:[#allocation6 + $0xe0] sm:$0xff]  ;;  %v2279_v5 = vld [vmem:[#allocation6 + $0xd0] sm:$0xff] }
  0x29   :  { %v170_v16 = vadd.f32 %v169_v9, %v168_v1  ;;  %v118_v19 = vadd.f32 %v117_v10, %v116_v2  ;;  %v184_v20 = vadd.f32 %v183_v31, %v2238_v21  ;;  %v197_v17 = vrot.slane %v124_v11, 6  ;;  %v2270_v62 = vld [vmem:[#allocation6 + $0x1e0] sm:$0xff]  ;;  %v2283_v8 = vld [vmem:[#allocation6 + $0x1d0] sm:$0xff] }
  0x2a   :  { %v198_v22 = vrot.slane %v130_v12, 4  ;;  %v178_v24 = vadd.f32 %v177_v18, %v176_v30  ;;  %v199_v25 = vrot.slane %v136_v13, 2  ;;  %v200_v26 = vrot.slane %v148_v47, 6  ;;  %v2277_v4 = vld [vmem:[#allocation6 + $0x3e0] sm:$0xff]  ;;  %v2285_v9 = vld [vmem:[#allocation6 + $0x2d0] sm:$0xff] }
  0x2b   :  { %v171_v23 = vrot.slane %v170_v16, 1  ;;  %vm207_vm1 = vcmask 1045508   ;;  %v201_v27 = vrot.slane %v160_v7, 6  ;;  %v204_v28 = vrot.slane %v184_v20, 6  ;;  %v2287_v10 = vld [vmem:[#allocation6 + $0x3d0] sm:$0xff]  ;;  %v2296_v18 = vld [vmem:[#allocation6 + $0x2c0] sm:$0xff] }
  0x2c   :  { %vm209_vm2 = vcmask 1043456   ;;  %vm221_vm3 = vcmask 1041409   ;;  %v202_v32 = vrot.slane %v166_v15, 4  ;;  %vm223_vm4 = vcmask 1043459   ;;  %v2292_v15 = vld [vmem:[#allocation6 + $0xc0] sm:$0xff] }
  0x2d   :  { %v172_v29 = vadd.f32 %v171_v23, %v170_v16  ;;  %v206_v33 = vsel %vm205_vm0, %v118_v19, %v197_v17  ;;  %v211_v34 = vsel %vm205_vm0, %v142_v54, %v200_v26  ;;  %v215_v21 = vsel %vm205_vm0, %v178_v24, %v204_v28  ;;  %v2258_v54 = vld [vmem:[#allocation6 + $0x1f0] sm:$0xff]  ;;  %v2294_v16 = vld [vmem:[#allocation6 + $0x1c0] sm:$0xff] }
  0x2e   :  { %v208_v35 = vsel %vm207_vm1, %v198_v22, %v199_v25  ;;  %v212_v30 = vsel %vm205_vm0, %v154_v14, %v201_v27  ;;  %v231_v36 = vrot.slane %v215_v21, 7  ;;  %vm225_vm5 = vcmask 1045509   ;;  %v2302_v22 = vld [vmem:[#allocation6 + $0x3c0] sm:$0xff]  ;;  %v2304_v23 = vld [vmem:[#allocation6 + $0xb0] sm:$0xff] }
  0x2f   :  { %v203_v31 = vrot.slane %v172_v29, 2  ;;  %vm227_vm6 = vcmask 1047559   ;;  %v210_v40 = vsel %vm209_vm2, %v206_v33, %v208_v35  ;;  %v2176_v51 = vmov 269488144   ;;  %v2306_v24 = vld [vmem:[#allocation6 + $0x1b0] sm:$0xff] }
  0x30   :  { %v232_v38 = vsel %vm221_vm3, %v231_v36, %v211_v34  ;;  %v2254_v52 = vunpack.c.l.s4 %v2176_v51  ;;  %v578_v57 = vunpack.c.l.bf16 %v2256_v53  ;;  %v642_v58 = vunpack.c.l.bf16 %v2258_v54  ;;  %v2311_v28 = vld [vmem:[#allocation6 + $0x2b0] sm:$0xff] }
  0x31   :  { %v213_v37 = vsel %vm207_vm1, %v202_v32, %v203_v31  ;;  %v233_v42 = vsel %vm223_vm4, %v231_v36, %v232_v38  ;;  %v706_v59 = vunpack.c.l.bf16 %v2260_v55  ;;  %v770_v0 = vunpack.c.l.bf16 %v2266_v60  ;;  %v2313_v29 = vld [vmem:[#allocation6 + $0x3b0] sm:$0xff] }
  0x32   :  { %v214_v41 = vsel %vm209_vm2, %v212_v30, %v213_v37  ;;  %v234_v44 = vsel %vm225_vm5, %v231_v36, %v233_v42  ;;  %v3377_v56 = vunpack.c.0.s8 %v2254_v52  ;;  %v574_v1 = vunpack.c.l.bf16 %v2268_v61  ;;  %929 = vmatpush.msra.mxu0 %v578_v57  ;;  %949 = vmatpush.msra.mxu1 %v642_v58 }
  0x33   :  { %v220_v43 = vrot.slane %v214_v41, 7  ;;  %v235_v45 = vsel %vm227_vm6, %v231_v36, %v234_v44  ;;  %v638_v2 = vunpack.c.l.bf16 %v2270_v62  ;;  %v702_v6 = vunpack.c.l.bf16 %v2275_v3  ;;  %969 = vmatpush.msra.mxu2 %v706_v59  ;;  %989 = vmatpush.msra.mxu3 %v770_v0  ;;  %v2333_v59 = vld [vmem:[#allocation6 + $0xa0] sm:$0xff] }
  0x34   :  { %v239_v47 = vadd.f32 %v235_v45, %v112_v39  ;;  %v766_v7 = vunpack.c.l.bf16 %v2277_v4  ;;  %v570_v12 = vunpack.c.l.bf16 %v2279_v5  ;;  %v634_v13 = vunpack.c.l.bf16 %v2283_v8  ;;  %930 = vmatpush.msra.mxu0 %v574_v1  ;;  %v2337_v0 = vld [vmem:[#allocation6 + $0x2a0] sm:$0xff] }
  0x35   :  { %v222_v46 = vsel %vm221_vm3, %v220_v43, %v210_v40  ;;  %v698_v14 = vunpack.c.l.bf16 %v2285_v9  ;;  %950 = vmatpush.msra.mxu1 %v638_v2  ;;  %v762_v20 = vunpack.c.l.bf16 %v2287_v10  ;;  %v566_v17 = vunpack.c.l.bf16 %v2292_v15  ;;  %970 = vmatpush.msra.mxu2 %v702_v6 }
  0x36   :  { %v224_v48 = vsel %vm223_vm4, %v220_v43, %v222_v46  ;;  %241 = vst [vmem:[#allocation2 + $0x8] sm:$0xf] %v239_v47  ;;  %990 = vmatpush.msra.mxu3 %v766_v7  ;;  %v630_v25 = vunpack.c.l.bf16 %v2294_v16  ;;  %v694_v26 = vunpack.c.l.bf16 %v2296_v18  ;;  %v758_v27 = vunpack.c.l.bf16 %v2302_v22  ;;  %931 = vmatpush.msra.mxu0 %v570_v12  ;;  %v2342_v7 = vld [vmem:[#allocation6 + $0x3a0] sm:$0xff]  ;;  %v2345_v12 = vld [vmem:[#allocation6 + $0x90] sm:$0xff] }
  0x37   :  { %v226_v49 = vsel %vm225_vm5, %v220_v43, %v224_v48  ;;  %951 = vmatpush.msra.mxu1 %v634_v13  ;;  %v562_v34 = vunpack.c.l.bf16 %v2304_v23  ;;  %971 = vmatpush.msra.mxu2 %v698_v14  ;;  %v626_v21 = vunpack.c.l.bf16 %v2306_v24  ;;  %v690_v31 = vunpack.c.l.bf16 %v2311_v28  ;;  %v2347_v13 = vld [vmem:[#allocation6 + $0x190] sm:$0xff] }
  0x38   :  { %v228_v50 = vsel %vm227_vm6, %v220_v43, %v226_v49  ;;  %991 = vmatpush.msra.mxu3 %v762_v20  ;;  %v754_v35 = vunpack.c.l.bf16 %v2313_v29  ;;  %932 = vmatpush.msra.mxu0 %v566_v17  ;;  %v558_v1 = vunpack.c.l.bf16 %v2333_v59  ;;  %v686_v6 = vunpack.c.l.bf16 %v2337_v0  ;;  %v2349_v14 = vld [vmem:[#allocation6 + $0x290] sm:$0xff] }
  0x39   :  { %952 = vmatpush.msra.mxu1 %v630_v25  ;;  %972 = vmatpush.msra.mxu2 %v694_v26  ;;  %3424 = vst [vmem:[#allocation16_spill] sm:$0xff] %v2349_v14  ;;  %v618_v20 = vunpack.c.l.bf16 %v2347_v13  ;;  %v682_v17 = vunpack.c.l.bf16 %v2349_v14  ;;  %v2354_v25 = vld [vmem:[#allocation6 + $0x390] sm:$0xff] }
  0x3a   :  { %992 = vmatpush.msra.mxu3 %v758_v27  ;;  %933 = vmatpush.msra.mxu0 %v562_v34  ;;  %3425 = vst [vmem:[#allocation17_spill] sm:$0xff] %v2354_v25  ;;  %v746_v26 = vunpack.c.l.bf16 %v2354_v25  ;;  %v2357_v27 = vld [vmem:[#allocation6 + $0x80] sm:$0xff]  ;;  %v639_v25 = vunpack.c.h.bf16 %v2270_v62 }
  0x3b   :  { %953 = vmatpush.msra.mxu1 %v626_v21  ;;  %973 = vmatpush.msra.mxu2 %v690_v31  ;;  %v2359_v34 = vld [vmem:[#allocation6 + $0x180] sm:$0xff]  ;;  %v550_v31 = vunpack.c.l.bf16 %v2357_v27 }
  0x3c   :  { %993 = vmatpush.msra.mxu3 %v754_v35  ;;  %934 = vmatpush.msra.mxu0 %v558_v1  ;;  %v2361_v21 = vld [vmem:[#allocation6 + $0x280] sm:$0xff]  ;;  %v614_v35 = vunpack.c.l.bf16 %v2359_v34  ;;  %v2393_v1 = vld [vmem:[#allocation6 + $0x50] sm:$0xff] }
  0x3d   :  { %v246_v63 = vld [vmem:[#allocation2 + $0x8] sm:$0xf]  ;;  %974 = vmatpush.msra.mxu2 %v686_v6  ;;  %3426 = vst [vmem:[#allocation18_spill] sm:$0xff] %v2361_v21  ;;  %v2397_v6 = vld [vmem:[#allocation6 + $0x250] sm:$0xff]  ;;  %v2491_v62 = vld [vmem:[#allocation6 + $0x5c0] sm:$0xff] }
  0x3e   :  { %3432 = vst [vmem:[#allocation24_spill] sm:$0xff] %v2397_v6 }
  0x3f   :  { %975 = vmatpush.msra.mxu2 %v682_v17  ;;  %v2402_v17 = vld [vmem:[#allocation6 + $0x350] sm:$0xff] }
  0x40   :  { %3433 = vst [vmem:[#allocation25_spill] sm:$0xff] %v2402_v17 }
  0x8a   :  { %v251_v11 = vpop.permute.xlu0 %250 }
  0x8b   :  { %v255_v19 = vperm.slane %v251_v11, %v3377_v56  ;;  %v750_v11 = vunpack.c.l.bf16 %v2342_v7  ;;  %v2426_v56 = vld [vmem:[#allocation6 + $0x330] sm:$0xff] }
  0x8c   :  { %3437 = vst [vmem:[#allocation29_spill] sm:$0xff] %v2426_v56 }
  0x8d   :  { %v2315_v32 = vmul.f32 %v255_v19, %v228_v50  ;;  %v2317_v33 = vmul.f32 %v255_v19, %v246_v63  ;;  %v2335_v63 = vld [vmem:[#allocation6 + $0x1a0] sm:$0xff]  ;;  %v554_v19 = vunpack.c.l.bf16 %v2345_v12  ;;  %994 = vmatpush.msra.mxu3 %v750_v11  ;;  %v538_v11 = vunpack.c.l.bf16 %v2393_v1 }
  0x8e   :  { %v622_v2 = vunpack.c.l.bf16 %v2335_v63 }
  0x8f   :  { %v259_v30 = vmul.f32 %v2315_v32, %v2315_v32  ;;  %v260_v36 = vmul.f32 %v2317_v33, %v2317_v33  ;;  %935 = vmatpush.msra.mxu0 %v554_v19  ;;  %995 = vmatpush.msra.mxu3 %v746_v26  ;;  %v730_v26 = vunpack.c.l.bf16 %v2402_v17  ;;  %v2438_v17 = vld [vmem:[#allocation6 + $0x320] sm:$0xff] }
  0x90   :  { %954 = vmatpush.msra.mxu1 %v622_v2  ;;  %v2395_v2 = vld [vmem:[#allocation6 + $0x150] sm:$0xff]  ;;  %3439 = vst [vmem:[#allocation31_spill] sm:$0xff] %v2438_v17 }
  0x91   :  { %263 = vst [vmem:[#allocation1] ss:$4 sm:$0xff] %v259_v30  ;;  %v678_v30 = vunpack.c.l.bf16 %v2361_v21  ;;  %936 = vmatpush.msra.mxu0 %v550_v31  ;;  %v602_v19 = vunpack.c.l.bf16 %v2395_v2  ;;  %v2405_v31 = vld [vmem:[#allocation6 + $0x40] sm:$0xff] }
  0x92   :  { %265 = vst [vmem:[#allocation1 + $0x20] ss:$4 sm:$0xff] %v260_v36  ;;  %955 = vmatpush.msra.mxu1 %v618_v20  ;;  %v2366_v36 = vld [vmem:[#allocation6 + $0x380] sm:$0xff]  ;;  %v666_v20 = vunpack.c.l.bf16 %v2397_v6  ;;  %v2445_v6 = vld [vmem:[#allocation6 + $0x210] sm:$0xff] }
  0x93   :  { %3427 = vst [vmem:[#allocation19_spill] sm:$0xff] %v2366_v36  ;;  %976 = vmatpush.msra.mxu2 %v678_v30  ;;  %v2409_v30 = vld [vmem:[#allocation6 + $0x240] sm:$0xff] }
  0x94   :  { %956 = vmatpush.msra.mxu1 %v614_v35  ;;  %v2407_v35 = vld [vmem:[#allocation6 + $0x140] sm:$0xff]  ;;  %3434 = vst [vmem:[#allocation26_spill] sm:$0xff] %v2409_v30 }
  0x95   :  { %3440 = vst [vmem:[#allocation32_spill] sm:$0xff] %v2445_v6  ;;  %v2475_v21 = vld [vmem:[#allocation6 + $0x5e0] sm:$0xff] }
  0x98   :  { %v266_v37 = vld.sshfl [vmem:[#allocation1] sm:$0xff pattern:$0x73625140]  ;;  %v267_v38 = vld.sshfl [vmem:[#allocation1 + $0x8] sm:$0xff pattern:$0x73625140] }
  0x99   :  { %v268_v39 = vld.sshfl [vmem:[#allocation1 + $0x10] sm:$0xff pattern:$0x73625140]  ;;  %v278_v40 = vsel %vm205_vm0, %v266_v37, 0.0  ;;  %v279_v41 = vsel %vm205_vm0, %v267_v38, 0.0  ;;  %v742_v37 = vunpack.c.l.bf16 %v2366_v36  ;;  %v2369_v38 = vld [vmem:[#allocation6 + $0x70] sm:$0xff] }
  0x9a   :  { %v269_v42 = vld.sshfl [vmem:[#allocation1 + $0x18] sm:$0xff pattern:$0x73625140]  ;;  %v280_v43 = vadd.f32 %v279_v41, %v278_v40  ;;  %v281_v44 = vsel %vm205_vm0, %v268_v39, 0.0  ;;  %v2371_v39 = vld [vmem:[#allocation6 + $0x170] sm:$0xff]  ;;  %v546_v41 = vunpack.c.l.bf16 %v2369_v38 }
  0x9b   :  { %v270_v45 = vld.sshfl [vmem:[#allocation1 + $0x20] sm:$0xff pattern:$0x73625140]  ;;  %v283_v47 = vsel %vm205_vm0, %v269_v42, 0.0  ;;  %v610_v42 = vunpack.c.l.bf16 %v2371_v39  ;;  %996 = vmatpush.msra.mxu3 %v742_v37  ;;  %v534_v37 = vunpack.c.l.bf16 %v2405_v31  ;;  %v2473_v36 = vld [vmem:[#allocation6 + $0x4e0] sm:$0xff] }
  0x9c   :  { %v282_v46 = vadd.f32 %v281_v44, %v280_v43  ;;  %v271_v48 = vld.sshfl [vmem:[#allocation1 + $0x28] sm:$0xff pattern:$0x73625140]  ;;  %v285_v50 = vsel %vm205_vm0, %v270_v45, 0.0  ;;  %937 = vmatpush.msra.mxu0 %v546_v41  ;;  %v598_v41 = vunpack.c.l.bf16 %v2407_v35 }
  0x9d   :  { %v287_v57 = vsel %vm205_vm0, %v271_v48, 0.0  ;;  %v2373_v40 = vld [vmem:[#allocation6 + $0x270] sm:$0xff]  ;;  %v2385_v48 = vld [vmem:[#allocation6 + $0x260] sm:$0xff]  ;;  %957 = vmatpush.msra.mxu1 %v610_v42  ;;  %v662_v42 = vunpack.c.l.bf16 %v2409_v30 }
  0x9e   :  { %v284_v49 = vadd.f32 %v283_v47, %v282_v46  ;;  %3428 = vst [vmem:[#allocation20_spill] sm:$0xff] %v2373_v40  ;;  %v674_v43 = vunpack.c.l.bf16 %v2373_v40  ;;  %v2378_v44 = vld [vmem:[#allocation6 + $0x370] sm:$0xff]  ;;  %v2381_v46 = vld [vmem:[#allocation6 + $0x60] sm:$0xff] }
  0x9f   :  { %3429 = vst [vmem:[#allocation21_spill] sm:$0xff] %v2378_v44  ;;  %v738_v45 = vunpack.c.l.bf16 %v2378_v44  ;;  %v2383_v47 = vld [vmem:[#allocation6 + $0x160] sm:$0xff] }
  0xa0   :  { %v286_v51 = vadd.f32 %v285_v50, %v284_v49  ;;  %3430 = vst [vmem:[#allocation22_spill] sm:$0xff] %v2385_v48  ;;  %v542_v49 = vunpack.c.l.bf16 %v2381_v46  ;;  %v606_v50 = vunpack.c.l.bf16 %v2383_v47  ;;  %977 = vmatpush.msra.mxu2 %v674_v43  ;;  %v2414_v43 = vld [vmem:[#allocation6 + $0x340] sm:$0xff] }
  0xa1   :  { %997 = vmatpush.msra.mxu3 %v738_v45  ;;  %3435 = vst [vmem:[#allocation27_spill] sm:$0xff] %v2414_v43  ;;  %v726_v45 = vunpack.c.l.bf16 %v2414_v43  ;;  %v2431_v43 = vld [vmem:[#allocation6 + $0x120] sm:$0xff] }
  0xa2   :  { %v288_v58 = vadd.f32 %v287_v57, %v286_v51  ;;  %v670_v51 = vunpack.c.l.bf16 %v2385_v48  ;;  %v2390_v57 = vld [vmem:[#allocation6 + $0x360] sm:$0xff]  ;;  %938 = vmatpush.msra.mxu0 %v542_v49  ;;  %958 = vmatpush.msra.mxu1 %v606_v50  ;;  %v2417_v49 = vld [vmem:[#allocation6 + $0x30] sm:$0xff] }
  0xa3   :  { %3431 = vst [vmem:[#allocation23_spill] sm:$0xff] %v2390_v57  ;;  %v2419_v50 = vld [vmem:[#allocation6 + $0x130] sm:$0xff]  ;;  %v2433_v30 = vld [vmem:[#allocation6 + $0x220] sm:$0xff] }
  0xa4   :  { %289 = vadd.xlane.f32.xlu0 %v288_v58  ;;  %v734_v58 = vunpack.c.l.bf16 %v2390_v57  ;;  %978 = vmatpush.msra.mxu2 %v670_v51  ;;  %v2421_v51 = vld [vmem:[#allocation6 + $0x230] sm:$0xff]  ;;  %3438 = vst [vmem:[#allocation30_spill] sm:$0xff] %v2433_v30  ;;  %v2457_v48 = vld [vmem:[#allocation6 + $0x200] sm:$0xff] }
  0xa5   :  { %939 = vmatpush.msra.mxu0 %v538_v11  ;;  %959 = vmatpush.msra.mxu1 %v602_v19  ;;  %3436 = vst [vmem:[#allocation28_spill] sm:$0xff] %v2421_v51  ;;  %v594_v11 = vunpack.c.l.bf16 %v2419_v50  ;;  %v658_v19 = vunpack.c.l.bf16 %v2421_v51  ;;  %v654_v51 = vunpack.c.l.bf16 %v2433_v30  ;;  %v650_v30 = vunpack.c.l.bf16 %v2445_v6  ;;  %v2450_v57 = vld [vmem:[#allocation6 + $0x310] sm:$0xff]  ;;  %v2462_v44 = vld [vmem:[#allocation6 + $0x300] sm:$0xff] }
  0xa6   :  { %998 = vmatpush.msra.mxu3 %v734_v58  ;;  %979 = vmatpush.msra.mxu2 %v666_v20  ;;  %v530_v58 = vunpack.c.l.bf16 %v2417_v49  ;;  %v722_v20 = vunpack.c.l.bf16 %v2426_v56  ;;  %v2443_v56 = vld [vmem:[#allocation6 + $0x110] sm:$0xff]  ;;  %3441 = vst [vmem:[#allocation33_spill] sm:$0xff] %v2450_v57  ;;  %v646_v6 = vunpack.c.l.bf16 %v2457_v48 }
  0xa7   :  { %940 = vmatpush.msra.mxu0 %v534_v37  ;;  %960 = vmatpush.msra.mxu1 %v598_v41  ;;  %v590_v41 = vunpack.c.l.bf16 %v2431_v43  ;;  %3442 = vst [vmem:[#allocation34_spill] sm:$0xff] %v2457_v48  ;;  %v643_v48 = vunpack.c.h.bf16 %v2258_v54 }
  0xa8   :  { %999 = vmatpush.msra.mxu3 %v730_v26  ;;  %980 = vmatpush.msra.mxu2 %v662_v42  ;;  %v2429_v26 = vld [vmem:[#allocation6 + $0x20] sm:$0xff]  ;;  %v718_v42 = vunpack.c.l.bf16 %v2438_v17  ;;  %3443 = vst [vmem:[#allocation35_spill] sm:$0xff] %v2462_v44 }
  0xa9   :  { %941 = vmatpush.msra.mxu0 %v530_v58  ;;  %961 = vmatpush.msra.mxu1 %v594_v11  ;;  %v526_v37 = vunpack.c.l.bf16 %v2429_v26  ;;  %v586_v11 = vunpack.c.l.bf16 %v2443_v56  ;;  %v2455_v17 = vld [vmem:[#allocation6 + $0x100] sm:$0xff] }
  0xaa   :  { %1000 = vmatpush.msra.mxu3 %v726_v45  ;;  %981 = vmatpush.msra.mxu2 %v658_v19  ;;  %v2441_v45 = vld [vmem:[#allocation6 + $0x10] sm:$0xff]  ;;  %v714_v19 = vunpack.c.l.bf16 %v2450_v57  ;;  %v710_v57 = vunpack.c.l.bf16 %v2462_v44  ;;  %v575_v44 = vunpack.c.h.bf16 %v2268_v61  ;;  %v2489_v61 = vld [vmem:[#allocation6 + $0x4c0] sm:$0xff] }
  0xab   :  { %942 = vmatpush.msra.mxu0 %v526_v37  ;;  %962 = vmatpush.msra.mxu1 %v590_v41  ;;  %v522_v58 = vunpack.c.l.bf16 %v2441_v45  ;;  %v582_v41 = vunpack.c.l.bf16 %v2455_v17 }
  0xac   :  { %1001 = vmatpush.msra.mxu3 %v722_v20  ;;  %982 = vmatpush.msra.mxu2 %v654_v51  ;;  %v2453_v20 = vld [vmem:[#allocation6] sm:$0xff]  ;;  %v2464_v51 = vld [vmem:[#allocation6 + $0x4f0] sm:$0xff] }
  0xad   :  { %943 = vmatpush.msra.mxu0 %v522_v58  ;;  %963 = vmatpush.msra.mxu1 %v586_v11  ;;  %v518_v37 = vunpack.c.l.bf16 %v2453_v20  ;;  %v834_v40 = vunpack.c.l.bf16 %v2464_v51  ;;  %v579_v11 = vunpack.c.h.bf16 %v2256_v53  ;;  %v2481_v53 = vld [vmem:[#allocation6 + $0x4d0] sm:$0xff] }
  0xae   :  { %1002 = vmatpush.msra.mxu3 %v718_v42  ;;  %v2466_v42 = vld [vmem:[#allocation6 + $0x5f0] sm:$0xff]  ;;  %983 = vmatpush.msra.mxu2 %v650_v30  ;;  %v830_v30 = vunpack.c.l.bf16 %v2473_v36  ;;  %v826_v54 = vunpack.c.l.bf16 %v2481_v53 }
  0xaf   :  { %v898_v58 = vunpack.c.l.bf16 %v2466_v42  ;;  %944 = vmatpush.msra.mxu0 %v518_v37  ;;  %964 = vmatpush.msra.mxu1 %v582_v41  ;;  %v2483_v37 = vld [vmem:[#allocation6 + $0x5d0] sm:$0xff]  ;;  %v635_v41 = vunpack.c.h.bf16 %v2283_v8 }
  0xb0   :  { %1003 = vmatpush.msra.mxu3 %v714_v19  ;;  %984 = vmatpush.msra.mxu2 %v646_v6  ;;  %v894_v19 = vunpack.c.l.bf16 %v2475_v21  ;;  %v571_v6 = vunpack.c.h.bf16 %v2279_v5  ;;  %v2497_v5 = vld [vmem:[#allocation6 + $0x4b0] sm:$0xff] }
  0xb1   :  { %1009 = vmatpush.msrb.mxu0 %v834_v40  ;;  %1029 = vmatpush.msrb.mxu1 %v898_v58  ;;  %v822_v40 = vunpack.c.l.bf16 %v2489_v61  ;;  %v567_v58 = vunpack.c.h.bf16 %v2292_v15  ;;  %v2499_v8 = vld [vmem:[#allocation6 + $0x5b0] sm:$0xff]  ;;  %v2505_v15 = vld [vmem:[#allocation6 + $0x4a0] sm:$0xff] }
  0xb2   :  { %1004 = vmatpush.msra.mxu3 %v710_v57  ;;  %1049 = vmatpush.msrb.mxu2 %v579_v11  ;;  %v890_v57 = vunpack.c.l.bf16 %v2483_v37  ;;  %v631_v11 = vunpack.c.h.bf16 %v2294_v16  ;;  %v2507_v16 = vld [vmem:[#allocation6 + $0x5a0] sm:$0xff] }
  0xb3   :  { %1010 = vmatpush.msrb.mxu0 %v830_v30  ;;  %1030 = vmatpush.msrb.mxu1 %v894_v19  ;;  %v818_v30 = vunpack.c.l.bf16 %v2497_v5  ;;  %v627_v19 = vunpack.c.h.bf16 %v2306_v24  ;;  %v2517_v24 = vld [vmem:[#allocation6 + $0x590] sm:$0xff] }
  0xb4   :  { %1069 = vmatpush.msrb.mxu3 %v643_v48  ;;  %1050 = vmatpush.msrb.mxu2 %v575_v44  ;;  %v886_v48 = vunpack.c.l.bf16 %v2491_v62  ;;  %v563_v44 = vunpack.c.h.bf16 %v2304_v23  ;;  %v2515_v23 = vld [vmem:[#allocation6 + $0x490] sm:$0xff] }
  0xb5   :  { %1011 = vmatpush.msrb.mxu0 %v826_v54  ;;  %1031 = vmatpush.msrb.mxu1 %v890_v57  ;;  %v814_v54 = vunpack.c.l.bf16 %v2505_v15  ;;  %v878_v57 = vunpack.c.l.bf16 %v2507_v16 }
  0xb6   :  { %1070 = vmatpush.msrb.mxu3 %v639_v25  ;;  %1051 = vmatpush.msrb.mxu2 %v571_v6  ;;  %v882_v25 = vunpack.c.l.bf16 %v2499_v8  ;;  %v559_v6 = vunpack.c.h.bf16 %v2333_v59  ;;  %v874_v59 = vunpack.c.l.bf16 %v2517_v24 }
  0xb7   :  { %1012 = vmatpush.msrb.mxu0 %v822_v40  ;;  %1032 = vmatpush.msrb.mxu1 %v886_v48  ;;  %v810_v40 = vunpack.c.l.bf16 %v2515_v23  ;;  %v619_v48 = vunpack.c.h.bf16 %v2347_v13 }
  0xb8   :  { %1071 = vmatpush.msrb.mxu3 %v635_v41  ;;  %1052 = vmatpush.msrb.mxu2 %v567_v58  ;;  %v623_v41 = vunpack.c.h.bf16 %v2335_v63  ;;  %v555_v63 = vunpack.c.h.bf16 %v2345_v12  ;;  %v2524_v58 = vld [vmem:[#allocation6 + $0x480] sm:$0xff]  ;;  %v2534_v12 = vld [vmem:[#allocation6 + $0x570] sm:$0xff] }
  0xb9   :  { %1013 = vmatpush.msrb.mxu0 %v818_v30  ;;  %1033 = vmatpush.msrb.mxu1 %v882_v25  ;;  %v806_v30 = vunpack.c.l.bf16 %v2524_v58  ;;  %3444 = vst [vmem:[#allocation36_spill] sm:$0xff] %v2534_v12 }
  0xba   :  { %1072 = vmatpush.msrb.mxu3 %v631_v11  ;;  %1053 = vmatpush.msrb.mxu2 %v563_v44  ;;  %v2526_v11 = vld [vmem:[#allocation6 + $0x580] sm:$0xff]  ;;  %v551_v44 = vunpack.c.h.bf16 %v2357_v27 }
  0xbb   :  { %1014 = vmatpush.msrb.mxu0 %v814_v54  ;;  %1034 = vmatpush.msrb.mxu1 %v878_v57  ;;  %v870_v25 = vunpack.c.l.bf16 %v2526_v11  ;;  %v2532_v54 = vld [vmem:[#allocation6 + $0x470] sm:$0xff]  ;;  %v866_v57 = vunpack.c.l.bf16 %v2534_v12  ;;  %v2540_v27 = vld [vmem:[#allocation6 + $0x460] sm:$0xff]  ;;  %v607_v12 = vunpack.c.h.bf16 %v2383_v47 }
  0xbc   :  { %1073 = vmatpush.msrb.mxu3 %v627_v19  ;;  %1054 = vmatpush.msrb.mxu2 %v559_v6  ;;  %v615_v19 = vunpack.c.h.bf16 %v2359_v34  ;;  %v802_v13 = vunpack.c.l.bf16 %v2532_v54  ;;  %v547_v6 = vunpack.c.h.bf16 %v2369_v38  ;;  %v2542_v34 = vld [vmem:[#allocation6 + $0x560] sm:$0xff] }
  0xbd   :  { %1015 = vmatpush.msrb.mxu0 %v810_v40  ;;  %1035 = vmatpush.msrb.mxu1 %v874_v59  ;;  %3445 = vst [vmem:[#allocation37_spill] sm:$0xff] %v2542_v34  ;;  %v798_v59 = vunpack.c.l.bf16 %v2540_v27  ;;  %v2557_v47 = vld [vmem:[#allocation6 + $0x440] sm:$0xff] }
  0xbe   :  { %1074 = vmatpush.msrb.mxu3 %v623_v41  ;;  %1055 = vmatpush.msrb.mxu2 %v555_v63  ;;  %v611_v41 = vunpack.c.h.bf16 %v2371_v39  ;;  %v862_v63 = vunpack.c.l.bf16 %v2542_v34  ;;  %v2549_v39 = vld [vmem:[#allocation6 + $0x450] sm:$0xff] }
  0xbf   :  { %1016 = vmatpush.msrb.mxu0 %v806_v30  ;;  %1036 = vmatpush.msrb.mxu1 %v870_v25  ;;  %v2551_v30 = vld [vmem:[#allocation6 + $0x550] sm:$0xff]  ;;  %v794_v25 = vunpack.c.l.bf16 %v2549_v39 }
  0xc0   :  { %1075 = vmatpush.msrb.mxu3 %v619_v48  ;;  %1056 = vmatpush.msrb.mxu2 %v551_v44  ;;  %v543_v48 = vunpack.c.h.bf16 %v2381_v46  ;;  %3446 = vst [vmem:[#allocation38_spill] sm:$0xff] %v2551_v30  ;;  %v858_v44 = vunpack.c.l.bf16 %v2551_v30  ;;  %v603_v46 = vunpack.c.h.bf16 %v2395_v2  ;;  %v599_v30 = vunpack.c.h.bf16 %v2407_v35  ;;  %v2565_v2 = vld [vmem:[#allocation6 + $0x430] sm:$0xff] }
  0xc1   :  { %1017 = vmatpush.msrb.mxu0 %v802_v13  ;;  %1037 = vmatpush.msrb.mxu1 %v866_v57  ;;  %v2559_v13 = vld [vmem:[#allocation6 + $0x540] sm:$0xff]  ;;  %v790_v57 = vunpack.c.l.bf16 %v2557_v47 }
  0xc2   :  { %1076 = vmatpush.msrb.mxu3 %v615_v19  ;;  %1057 = vmatpush.msrb.mxu2 %v547_v6  ;;  %v539_v19 = vunpack.c.h.bf16 %v2393_v1  ;;  %v854_v6 = vunpack.c.l.bf16 %v2559_v13 }
  0xc3   :  { %1018 = vmatpush.msrb.mxu0 %v798_v59  ;;  %1038 = vmatpush.msrb.mxu1 %v862_v63  ;;  %v2567_v59 = vld [vmem:[#allocation6 + $0x530] sm:$0xff]  ;;  %v786_v63 = vunpack.c.l.bf16 %v2565_v2 }
  0xc4   :  { %1077 = vmatpush.msrb.mxu3 %v611_v41  ;;  %1058 = vmatpush.msrb.mxu2 %v543_v48  ;;  %v535_v41 = vunpack.c.h.bf16 %v2405_v31  ;;  %v531_v48 = vunpack.c.h.bf16 %v2417_v49 }
  0xc5   :  { %1019 = vmatpush.msrb.mxu0 %v794_v25  ;;  %1039 = vmatpush.msrb.mxu1 %v858_v44 }
  0xc6   :  { %1078 = vmatpush.msrb.mxu3 %v607_v12  ;;  %1059 = vmatpush.msrb.mxu2 %v539_v19  ;;  %v850_v12 = vunpack.c.l.bf16 %v2567_v59  ;;  %v3447_v19 = vunpack.c.0.s8 %v2254_v52  ;;  %v527_v52 = vunpack.c.h.bf16 %v2429_v26 }
  0xc7   :  { %1020 = vmatpush.msrb.mxu0 %v790_v57  ;;  %1040 = vmatpush.msrb.mxu1 %v854_v6  ;;  %v2584_v57 = vld [vmem:[#allocation6 + $0x410] sm:$0xff] }
  0xc8   :  { %1079 = vmatpush.msrb.mxu3 %v603_v46  ;;  %1060 = vmatpush.msrb.mxu2 %v535_v41  ;;  %v2582_v46 = vld [vmem:[#allocation6 + $0x520] sm:$0xff]  ;;  %v2586_v6 = vld [vmem:[#allocation6 + $0x510] sm:$0xff] }
  0xc9   :  { %1021 = vmatpush.msrb.mxu0 %v786_v63  ;;  %1041 = vmatpush.msrb.mxu1 %v850_v12  ;;  %v2590_v63 = vld [vmem:[#allocation6 + $0x400] sm:$0xff]  ;;  %v591_v12 = vunpack.c.h.bf16 %v2431_v43  ;;  %v519_v43 = vunpack.c.h.bf16 %v2453_v20 }
  0xca   :  { %1080 = vmatpush.msrb.mxu3 %v599_v30  ;;  %1061 = vmatpush.msrb.mxu2 %v531_v48  ;;  %v778_v48 = vunpack.c.l.bf16 %v2584_v57 }
  0xcc   :  { %1062 = vmatpush.msrb.mxu2 %v527_v52 }
 0x117   :  { %v2513_v14 = vpop.xlane.xlu0 %289 }
 0x118   :  { %2022 = vrsqrt.f32 %v2513_v14  ;;  %vm298_vm7 = vcmp.eq.f32.partialorder %v2513_v14, inf  ;;  %v301_v25 = vand.u32 2147483648, %v2513_v14  ;;  %vm300_vm8 = vcmp.eq.f32.partialorder %v2513_v14, 0.0 }
 0x11e   :  { %v2023_v40 = vpop.eup %2022 }
 0x11f   :  { %v292_v38 = vmul.f32 %v2023_v40, %v2513_v14 }
 0x121   :  { %v293_v34 = vmul.f32 %v2023_v40, %v292_v38  ;;  %v595_v38 = vunpack.c.h.bf16 %v2419_v50 }
 0x123   :  { %v294_v1 = vmul.f32 0.5, %v293_v34  ;;  %1081 = vmatpush.msrb.mxu3 %v595_v38  ;;  %v842_v38 = vunpack.c.l.bf16 %v2586_v6 }
 0x125   :  { %v295_v31 = vsub.f32 1.5, %v294_v1  ;;  %v846_v1 = vunpack.c.l.bf16 %v2582_v46  ;;  %1082 = vmatpush.msrb.mxu3 %v591_v12 }
 0x127   :  { %v296_v35 = vmul.f32 %v2023_v40, %v295_v31  ;;  %v2580_v40 = vld [vmem:[#allocation6 + $0x420] sm:$0xff]  ;;  %1042 = vmatpush.msrb.mxu1 %v846_v1  ;;  %v523_v31 = vunpack.c.h.bf16 %v2441_v45 }
 0x128   :  { %v782_v41 = vunpack.c.l.bf16 %v2580_v40 }
 0x129   :  { %v297_v34 = vmul.f32 %v296_v35, %v2513_v14  ;;  %1043 = vmatpush.msrb.mxu1 %v842_v38  ;;  %1063 = vmatpush.msrb.mxu2 %v523_v31  ;;  %v771_v38 = vunpack.c.h.bf16 %v2266_v60  ;;  %v835_v31 = vunpack.c.h.bf16 %v2464_v51  ;;  %v831_v60 = vunpack.c.h.bf16 %v2473_v36 }
 0x12a   :  { %1022 = vmatpush.msrb.mxu0 %v782_v41  ;;  %v895_v51 = vunpack.c.h.bf16 %v2475_v21  ;;  %v695_v36 = vunpack.c.h.bf16 %v2296_v18  ;;  %v759_v21 = vunpack.c.h.bf16 %v2302_v22  ;;  %v819_v18 = vunpack.c.h.bf16 %v2497_v5  ;;  %v3448_v5 = vld [vmem:[#allocation16_spill] sm:$0xff] }
 0x12b   :  { %v299_v49 = vsel %vm298_vm7, %v2513_v14, %v297_v34  ;;  %v2592_v14 = vld [vmem:[#allocation6 + $0x500] sm:$0xff]  ;;  %v587_v34 = vunpack.c.h.bf16 %v2443_v56  ;;  %1064 = vmatpush.msrb.mxu2 %v519_v43  ;;  %v883_v22 = vunpack.c.h.bf16 %v2499_v8  ;;  %v751_v43 = vunpack.c.h.bf16 %v2342_v7 }
 0x12c   :  { %v302_v50 = vsel %vm300_vm8, %v301_v25, %v299_v49  ;;  %v774_v25 = vunpack.c.l.bf16 %v2590_v63  ;;  %v838_v49 = vunpack.c.l.bf16 %v2592_v14  ;;  %1023 = vmatpush.msrb.mxu0 %v778_v48  ;;  %v707_v48 = vunpack.c.h.bf16 %v2260_v55 }
 0x12d   :  { %v303_v44 = vmax.f32 %v302_v50, 1e-12  ;;  %1083 = vmatpush.msrb.mxu3 %v587_v34  ;;  %v583_v50 = vunpack.c.h.bf16 %v2455_v17  ;;  %v899_v34 = vunpack.c.h.bf16 %v2466_v42  ;;  %v827_v42 = vunpack.c.h.bf16 %v2481_v53 }
 0x12e   :  { %1024 = vmatpush.msrb.mxu0 %v774_v25  ;;  %1044 = vmatpush.msrb.mxu1 %v838_v49  ;;  %v891_v49 = vunpack.c.h.bf16 %v2483_v37  ;;  %v755_v53 = vunpack.c.h.bf16 %v2313_v29  ;;  %v879_v29 = vunpack.c.h.bf16 %v2507_v16  ;;  %v683_v8 = vunpack.c.h.bf16 %v3448_v5 }
 0x12f   :  { %v308_v30 = vperm.slane %v303_v44, %v3447_v19  ;;  %1084 = vmatpush.msrb.mxu3 %v583_v50  ;;  %v3449_v50 = vld [vmem:[#allocation17_spill] sm:$0xff]  ;;  %v875_v7 = vunpack.c.h.bf16 %v2517_v24  ;;  %v803_v24 = vunpack.c.h.bf16 %v2532_v54  ;;  %v847_v5 = vunpack.c.h.bf16 %v2582_v46 }
 0x130   :  { %v775_v46 = vunpack.c.h.bf16 %v2590_v63 }
 0x131   :  { %2024 = vrcp.f32 %v308_v30  ;;  %v321_v45 = vand.u32 2147483648, %v308_v30  ;;  %v319_v19 = vand.u32 2147483647, %v308_v30  ;;  %vm315_vm10 = vweird.f32 %v308_v30 }
 0x133   :  { %v322_v1 = vor.u32 1.1754944e-38, %v321_v45  ;;  %vm320_vm12 = vcmp.eq.f32.partialorder %v319_v19, 8.507059e+37  ;;  %v3450_v45 = vld [vmem:[#allocation18_spill] sm:$0xff]  ;;  %v807_v19 = vunpack.c.h.bf16 %v2524_v58 }
 0x137   :  { %v2025_v35 = vpop.eup %2024 }
 0x138   :  { %v311_v26 = vmul.f32 %v2025_v35, %v308_v30  ;;  %vm316_vm9 = vweird.f32 %v2025_v35 }
 0x139   :  { %vm317_vm11 = vmor %vm315_vm10, %vm316_vm9 }
 0x13a   :  { %v312_v44 = vsub.f32 1.0, %v311_v26  ;;  %v823_v26 = vunpack.c.h.bf16 %v2489_v61 }
 0x13c   :  { %v313_v56 = vmul.f32 %v2025_v35, %v312_v44  ;;  %v747_v44 = vunpack.c.h.bf16 %v3449_v50 }
 0x13e   :  { %v314_v41 = vadd.f32 %v2025_v35, %v313_v56  ;;  %v3451_v56 = vld [vmem:[#allocation19_spill] sm:$0xff] }
 0x13f   :  { %v743_v16 = vunpack.c.h.bf16 %v3451_v56  ;;  %v839_v56 = vunpack.c.h.bf16 %v2592_v14 }
 0x140   :  { %v318_v52 = vsel %vm317_vm11, %v2025_v35, %v314_v41  ;;  %v703_v35 = vunpack.c.h.bf16 %v2275_v3  ;;  %v699_v3 = vunpack.c.h.bf16 %v2285_v9  ;;  %v887_v9 = vunpack.c.h.bf16 %v2491_v62 }
 0x141   :  { %v323_v20 = vsel %vm320_vm12, %v322_v1, %v318_v52  ;;  %v687_v62 = vunpack.c.h.bf16 %v2337_v0  ;;  %v811_v0 = vunpack.c.h.bf16 %v2515_v23  ;;  %v871_v41 = vunpack.c.h.bf16 %v2526_v11  ;;  %v3452_v1 = vld [vmem:[#allocation20_spill] sm:$0xff] }
 0x142   :  { %v324_v12 = vmul.f32 %v323_v20, %v2315_v32  ;;  %v325_v17 = vmul.f32 %v323_v20, %v2317_v33  ;;  %v767_v32 = vunpack.c.h.bf16 %v2277_v4  ;;  %v763_v4 = vunpack.c.h.bf16 %v2287_v10  ;;  %v3453_v20 = vld [vmem:[#allocation21_spill] sm:$0xff] }
 0x143   :  { %v691_v10 = vunpack.c.h.bf16 %v2311_v28  ;;  %v815_v28 = vunpack.c.h.bf16 %v2505_v15  ;;  %v679_v15 = vunpack.c.h.bf16 %v3450_v45  ;;  %v675_v52 = vunpack.c.h.bf16 %v3452_v1  ;;  %v2700_v1 = vld [vmem:[#allocation6 + $0x1e8] sm:$0xff] }
 0x144   :  { %914 = vst [vmem:[#allocation1] ss:$4 sm:$0xff] %v324_v12  ;;  %v739_v23 = vunpack.c.h.bf16 %v3453_v20  ;;  %v3454_v12 = vld [vmem:[#allocation36_spill] sm:$0xff]  ;;  %v799_v11 = vunpack.c.h.bf16 %v2540_v27 }
 0x145   :  { %916 = vst [vmem:[#allocation1 + $0x20] ss:$4 sm:$0xff] %v325_v17  ;;  %v867_v17 = vunpack.c.h.bf16 %v3454_v12  ;;  %v2706_v20 = vld [vmem:[#allocation6 + $0x3e8] sm:$0xff]  ;;  %v2710_v12 = vld [vmem:[#allocation6 + $0xd8] sm:$0xff] }
 0x14b   :  { %v2610_v30 = vld.sshfl [vmem:[#allocation1] sm:$0xff pattern:$0x73625140]  ;;  %v2612_v25 = vld.sshfl [vmem:[#allocation1 + $0x8] sm:$0xff pattern:$0x73625140] }
 0x14c   :  { %945 = vmatmul.f32.vlgmr.msra.gmra.mxu0 %v2610_v30  ;;  %965 = vmatmul.f32.vlgmr.msra.gmra.mxu1 %v2612_v25  ;;  %v2618_v33 = vld.sshfl [vmem:[#allocation1 + $0x10] sm:$0xff pattern:$0x73625140]  ;;  %v2620_v55 = vld.sshfl [vmem:[#allocation1 + $0x18] sm:$0xff pattern:$0x73625140] }
 0x14d   :  { %985 = vmatmul.f32.vlgmr.msra.gmra.mxu2 %v2618_v33  ;;  %1005 = vmatmul.f32.vlgmr.msra.gmra.mxu3 %v2620_v55  ;;  %v2638_v37 = vld.sshfl [vmem:[#allocation1 + $0x20] sm:$0xff pattern:$0x73625140]  ;;  %v2640_v61 = vld.sshfl [vmem:[#allocation1 + $0x28] sm:$0xff pattern:$0x73625140] }
 0x14e   :  { %1089 = vmatpush.msra.mxu0 %v707_v48  ;;  %1109 = vmatpush.msra.mxu1 %v771_v38  ;;  %v3455_v48 = vld [vmem:[#allocation22_spill] sm:$0xff] }
 0x14f   :  { %1129 = vmatpush.msra.mxu2 %v835_v31  ;;  %1149 = vmatpush.msra.mxu3 %v899_v34  ;;  %v671_v38 = vunpack.c.h.bf16 %v3455_v48  ;;  %v3456_v31 = vld [vmem:[#allocation23_spill] sm:$0xff]  ;;  %v3457_v34 = vld [vmem:[#allocation37_spill] sm:$0xff] }
 0x150   :  { %1090 = vmatpush.msra.mxu0 %v703_v35  ;;  %1110 = vmatpush.msra.mxu1 %v767_v32  ;;  %v735_v58 = vunpack.c.h.bf16 %v3456_v31  ;;  %v863_v35 = vunpack.c.h.bf16 %v3457_v34  ;;  %v3458_v32 = vld [vmem:[#allocation24_spill] sm:$0xff]  ;;  %v2718_v31 = vld [vmem:[#allocation6 + $0x2d8] sm:$0xff]  ;;  %v768_v34 = vunpack.c.l.bf16 %v2706_v20 }
 0x151   :  { %1130 = vmatpush.msra.mxu2 %v831_v60  ;;  %1150 = vmatpush.msra.mxu3 %v895_v51  ;;  %v667_v60 = vunpack.c.h.bf16 %v3458_v32  ;;  %v3459_v51 = vld [vmem:[#allocation25_spill] sm:$0xff] }
 0x152   :  { %1091 = vmatpush.msra.mxu0 %v699_v3  ;;  %1111 = vmatpush.msra.mxu1 %v763_v4  ;;  %v731_v54 = vunpack.c.h.bf16 %v3459_v51  ;;  %v795_v3 = vunpack.c.h.bf16 %v2549_v39  ;;  %v3460_v4 = vld [vmem:[#allocation38_spill] sm:$0xff]  ;;  %v2728_v32 = vld [vmem:[#allocation6 + $0x1c8] sm:$0xff] }
 0x153   :  { %1131 = vmatpush.msra.mxu2 %v827_v42  ;;  %1151 = vmatpush.msra.mxu3 %v891_v49  ;;  %v859_v42 = vunpack.c.h.bf16 %v3460_v4  ;;  %v3461_v49 = vld [vmem:[#allocation26_spill] sm:$0xff]  ;;  %v700_v4 = vunpack.c.l.bf16 %v2718_v31 }
 0x154   :  { %1092 = vmatpush.msra.mxu0 %v695_v36  ;;  %1112 = vmatpush.msra.mxu1 %v759_v21  ;;  %v663_v36 = vunpack.c.h.bf16 %v3461_v49  ;;  %v3462_v21 = vld [vmem:[#allocation27_spill] sm:$0xff] }
 0x155   :  { %1132 = vmatpush.msra.mxu2 %v823_v26  ;;  %1152 = vmatpush.msra.mxu3 %v887_v9  ;;  %v727_v27 = vunpack.c.h.bf16 %v3462_v21  ;;  %v791_v26 = vunpack.c.h.bf16 %v2557_v47  ;;  %v855_v9 = vunpack.c.h.bf16 %v2559_v13  ;;  %v783_v13 = vunpack.c.h.bf16 %v2580_v40  ;;  %v2738_v49 = vld [vmem:[#allocation6 + $0xb8] sm:$0xff] }
 0x156   :  { %1025 = vmatmul.f32.vlgmr.msrb.gmra.mxu0 %v2638_v37  ;;  %1045 = vmatmul.f32.vlgmr.msrb.gmra.mxu1 %v2640_v61 }
 0x157   :  { %1065 = vmatmul.f32.vlgmr.msrb.gmra.mxu2 %v2610_v30  ;;  %1085 = vmatmul.f32.vlgmr.msrb.gmra.mxu3 %v2612_v25 }
 0x158   :  { %1093 = vmatpush.msra.mxu0 %v691_v10  ;;  %1113 = vmatpush.msra.mxu1 %v755_v53  ;;  %v3463_v10 = vld [vmem:[#allocation28_spill] sm:$0xff] }
 0x159   :  { %1133 = vmatpush.msra.mxu2 %v819_v18  ;;  %1153 = vmatpush.msra.mxu3 %v883_v22  ;;  %v659_v53 = vunpack.c.h.bf16 %v3463_v10  ;;  %v3464_v18 = vld [vmem:[#allocation29_spill] sm:$0xff]  ;;  %v787_v22 = vunpack.c.h.bf16 %v2565_v2 }
 0x15a   :  { %1094 = vmatpush.msra.mxu0 %v687_v62  ;;  %1114 = vmatpush.msra.mxu1 %v751_v43  ;;  %v723_v39 = vunpack.c.h.bf16 %v3464_v18  ;;  %v851_v62 = vunpack.c.h.bf16 %v2567_v59  ;;  %v3465_v43 = vld [vmem:[#allocation30_spill] sm:$0xff]  ;;  %v779_v59 = vunpack.c.h.bf16 %v2584_v57  ;;  %v2750_v18 = vld [vmem:[#allocation6 + $0xa8] sm:$0xff] }
 0x15b   :  { %1134 = vmatpush.msra.mxu2 %v815_v28  ;;  %1154 = vmatpush.msra.mxu3 %v879_v29  ;;  %v655_v28 = vunpack.c.h.bf16 %v3465_v43  ;;  %v3466_v29 = vld [vmem:[#allocation31_spill] sm:$0xff]  ;;  %v2756_v43 = vld [vmem:[#allocation6 + $0x2a8] sm:$0xff] }
 0x15c   :  { %1095 = vmatpush.msra.mxu0 %v683_v8  ;;  %1115 = vmatpush.msra.mxu1 %v747_v44  ;;  %v719_v47 = vunpack.c.h.bf16 %v3466_v29  ;;  %v3467_v8 = vld [vmem:[#allocation32_spill] sm:$0xff]  ;;  %v3468_v44 = vld [vmem:[#allocation33_spill] sm:$0xff]  ;;  %v2694_v57 = vld [vmem:[#allocation6 + $0x2f8] sm:$0xff]  ;;  %3474 = vst [vmem:[#allocation19_spill] sm:$0xff] %v2756_v43 }
 0x15d   :  { %1135 = vmatpush.msra.mxu2 %v811_v0  ;;  %1155 = vmatpush.msra.mxu3 %v875_v7  ;;  %v651_v50 = vunpack.c.h.bf16 %v3467_v8  ;;  %v715_v2 = vunpack.c.h.bf16 %v3468_v44  ;;  %v843_v0 = vunpack.c.h.bf16 %v2586_v6  ;;  %v3469_v7 = vld [vmem:[#allocation34_spill] sm:$0xff]  ;;  %v560_v8 = vunpack.c.l.bf16 %v2750_v18 }
 0x15e   :  { %1096 = vmatpush.msra.mxu0 %v679_v15  ;;  %1116 = vmatpush.msra.mxu1 %v743_v16  ;;  %v647_v45 = vunpack.c.h.bf16 %v3469_v7  ;;  %v3470_v15 = vld [vmem:[#allocation35_spill] sm:$0xff]  ;;  %v2774_v7 = vld [vmem:[#allocation6 + $0x88] sm:$0xff] }
 0x15f   :  { %1136 = vmatpush.msra.mxu2 %v807_v19  ;;  %1156 = vmatpush.msra.mxu3 %v871_v41  ;;  %v711_v40 = vunpack.c.h.bf16 %v3470_v15  ;;  %v2690_v16 = vld [vmem:[#allocation6 + $0xf8] sm:$0xff]  ;;  %v2698_v41 = vld [vmem:[#allocation6 + $0xe8] sm:$0xff] }
 0x160   :  { %1097 = vmatpush.msra.mxu0 %v675_v52  ;;  %1117 = vmatpush.msra.mxu1 %v739_v23  ;;  %v2692_v19 = vld [vmem:[#allocation6 + $0x1f8] sm:$0xff]  ;;  %v580_v63 = vunpack.c.l.bf16 %v2690_v16  ;;  %v2704_v52 = vld [vmem:[#allocation6 + $0x2e8] sm:$0xff]  ;;  %v708_v23 = vunpack.c.l.bf16 %v2694_v57  ;;  %v576_v48 = vunpack.c.l.bf16 %v2698_v41 }
 0x161   :  { %1137 = vmatpush.msra.mxu2 %v803_v24  ;;  %1157 = vmatpush.msra.mxu3 %v867_v17  ;;  %v2696_v6 = vld [vmem:[#allocation6 + $0x3f8] sm:$0xff]  ;;  %v644_v14 = vunpack.c.l.bf16 %v2692_v19 }
 0x162   :  { %1098 = vmatpush.msra.mxu0 %v671_v38  ;;  %1118 = vmatpush.msra.mxu1 %v735_v58  ;;  %v772_v24 = vunpack.c.l.bf16 %v2696_v6  ;;  %v2712_v17 = vld [vmem:[#allocation6 + $0x1d8] sm:$0xff]  ;;  %v640_v38 = vunpack.c.l.bf16 %v2700_v1 }
 0x163   :  { %1138 = vmatpush.msra.mxu2 %v799_v11  ;;  %1158 = vmatpush.msra.mxu3 %v863_v35  ;;  %v2720_v58 = vld [vmem:[#allocation6 + $0x3d8] sm:$0xff]  ;;  %v704_v11 = vunpack.c.l.bf16 %v2704_v52  ;;  %v2726_v35 = vld [vmem:[#allocation6 + $0xc8] sm:$0xff]  ;;  %v636_v51 = vunpack.c.l.bf16 %v2712_v17 }
 0x164   :  { %1099 = vmatpush.msra.mxu0 %v667_v60  ;;  %1119 = vmatpush.msra.mxu1 %v731_v54  ;;  %v572_v60 = vunpack.c.l.bf16 %v2710_v12  ;;  %v2732_v54 = vld [vmem:[#allocation6 + $0x2c8] sm:$0xff]  ;;  %v568_v21 = vunpack.c.l.bf16 %v2726_v35  ;;  %v2768_v44 = vld [vmem:[#allocation6 + $0x298] sm:$0xff] }
 0x165   :  { %1139 = vmatpush.msra.mxu2 %v795_v3  ;;  %1159 = vmatpush.msra.mxu3 %v859_v42  ;;  %v2734_v3 = vld [vmem:[#allocation6 + $0x3c8] sm:$0xff]  ;;  %v764_v42 = vunpack.c.l.bf16 %v2720_v58  ;;  %v696_v10 = vunpack.c.l.bf16 %v2732_v54  ;;  %3476 = vst [vmem:[#allocation21_spill] sm:$0xff] %v2768_v44 }
 0x166   :  { %1100 = vmatpush.msra.mxu0 %v663_v36  ;;  %1120 = vmatpush.msra.mxu1 %v727_v27  ;;  %3471 = vst [vmem:[#allocation16_spill] sm:$0xff] %v2734_v3  ;;  %v2740_v36 = vld [vmem:[#allocation6 + $0x1b8] sm:$0xff]  ;;  %v632_v27 = vunpack.c.l.bf16 %v2728_v32 }
 0x167   :  { %1140 = vmatpush.msra.mxu2 %v791_v26  ;;  %1160 = vmatpush.msra.mxu3 %v855_v9  ;;  %v2744_v26 = vld [vmem:[#allocation6 + $0x2b8] sm:$0xff] }
 0x168   :  { %1101 = vmatpush.msra.mxu0 %v659_v53  ;;  %1121 = vmatpush.msra.mxu1 %v723_v39  ;;  %3472 = vst [vmem:[#allocation17_spill] sm:$0xff] %v2744_v26  ;;  %v2746_v9 = vld [vmem:[#allocation6 + $0x3b8] sm:$0xff]  ;;  %v760_v53 = vunpack.c.l.bf16 %v2734_v3  ;;  %v2752_v39 = vld [vmem:[#allocation6 + $0x1a8] sm:$0xff]  ;;  %v692_v29 = vunpack.c.l.bf16 %v2744_v26 }
 0x169   :  { %1141 = vmatpush.msra.mxu2 %v787_v22  ;;  %1161 = vmatpush.msra.mxu3 %v851_v62  ;;  %3473 = vst [vmem:[#allocation18_spill] sm:$0xff] %v2746_v9  ;;  %v564_v22 = vunpack.c.l.bf16 %v2738_v49  ;;  %v628_v62 = vunpack.c.l.bf16 %v2740_v36  ;;  %v2878_v26 = vld [vmem:[#allocation6 + $0x308] sm:$0xff]  ;;  %v2886_v3 = vld [vmem:[#allocation6 + $0x4f8] sm:$0xff] }
 0x16a   :  { %1102 = vmatpush.msra.mxu0 %v655_v28  ;;  %1122 = vmatpush.msra.mxu1 %v719_v47  ;;  %v2758_v28 = vld [vmem:[#allocation6 + $0x3a8] sm:$0xff]  ;;  %v756_v47 = vunpack.c.l.bf16 %v2746_v9  ;;  %3493 = vst [vmem:[#allocation35_spill] sm:$0xff] %v2878_v26 }
 0x16b   :  { %1142 = vmatpush.msra.mxu2 %v783_v13  ;;  %1162 = vmatpush.msra.mxu3 %v847_v5  ;;  %3475 = vst [vmem:[#allocation20_spill] sm:$0xff] %v2758_v28  ;;  %v2762_v13 = vld [vmem:[#allocation6 + $0x98] sm:$0xff]  ;;  %v2876_v9 = vld [vmem:[#allocation6 + $0x208] sm:$0xff] }
 0x16c   :  { %1103 = vmatpush.msra.mxu0 %v651_v50  ;;  %1123 = vmatpush.msra.mxu1 %v715_v2  ;;  %v2764_v5 = vld [vmem:[#allocation6 + $0x198] sm:$0xff]  ;;  %v624_v50 = vunpack.c.l.bf16 %v2752_v39  ;;  %v556_v15 = vunpack.c.l.bf16 %v2762_v13  ;;  %3492 = vst [vmem:[#allocation34_spill] sm:$0xff] %v2876_v9 }
 0x16d   :  { %1143 = vmatpush.msra.mxu2 %v779_v59  ;;  %1163 = vmatpush.msra.mxu3 %v843_v0  ;;  %v2770_v2 = vld [vmem:[#allocation6 + $0x398] sm:$0xff]  ;;  %v688_v59 = vunpack.c.l.bf16 %v2756_v43  ;;  %v752_v0 = vunpack.c.l.bf16 %v2758_v28 }
 0x16e   :  { %1104 = vmatpush.msra.mxu0 %v647_v45  ;;  %1124 = vmatpush.msra.mxu1 %v711_v40  ;;  %3477 = vst [vmem:[#allocation36_spill] sm:$0xff] %v2770_v2  ;;  %v2776_v45 = vld [vmem:[#allocation6 + $0x188] sm:$0xff]  ;;  %v620_v40 = vunpack.c.l.bf16 %v2764_v5  ;;  %v2864_v28 = vld [vmem:[#allocation6 + $0x218] sm:$0xff] }
 0x16f   :  { %1144 = vmatpush.msra.mxu2 %v775_v46  ;;  %1164 = vmatpush.msra.mxu3 %v839_v56  ;;  %v2780_v46 = vld [vmem:[#allocation6 + $0x288] sm:$0xff]  ;;  %v2866_v43 = vld [vmem:[#allocation6 + $0x318] sm:$0xff] }
 0x170   :  { %1105 = vmatmul.f32.vlgmr.msra.gmra.mxu0 %v2618_v33  ;;  %1125 = vmatmul.f32.vlgmr.msra.gmra.mxu1 %v2620_v55  ;;  %3478 = vst [vmem:[#allocation22_spill] sm:$0xff] %v2780_v46  ;;  %v2782_v56 = vld [vmem:[#allocation6 + $0x388] sm:$0xff] }
 0x171   :  { %1145 = vmatmul.f32.vlgmr.msra.gmra.mxu2 %v2638_v37  ;;  %1165 = vmatmul.f32.vlgmr.msra.gmra.mxu3 %v2640_v61  ;;  %3479 = vst [vmem:[#allocation23_spill] sm:$0xff] %v2782_v56 }
 0x172   :  { %1169 = vmatpush.msrb.mxu0 %v580_v63  ;;  %1189 = vmatpush.msrb.mxu1 %v644_v14  ;;  %v684_v63 = vunpack.c.l.bf16 %v2768_v44  ;;  %v748_v14 = vunpack.c.l.bf16 %v2770_v2  ;;  %v2852_v2 = vld [vmem:[#allocation6 + $0x228] sm:$0xff] }
 0x173   :  { %1209 = vmatpush.msrb.mxu2 %v708_v23  ;;  %1229 = vmatpush.msrb.mxu3 %v772_v24  ;;  %v2786_v23 = vld [vmem:[#allocation6 + $0x78] sm:$0xff]  ;;  %3490 = vst [vmem:[#allocation32_spill] sm:$0xff] %v2852_v2  ;;  %v2854_v44 = vld [vmem:[#allocation6 + $0x328] sm:$0xff] }
 0x174   :  { %1170 = vmatpush.msrb.mxu0 %v576_v48  ;;  %1190 = vmatpush.msrb.mxu1 %v640_v38  ;;  %v2788_v24 = vld [vmem:[#allocation6 + $0x178] sm:$0xff]  ;;  %v552_v48 = vunpack.c.l.bf16 %v2774_v7  ;;  %v616_v38 = vunpack.c.l.bf16 %v2776_v45  ;;  %3491 = vst [vmem:[#allocation33_spill] sm:$0xff] %v2854_v44 }
 0x175   :  { %1210 = vmatpush.msrb.mxu2 %v704_v11  ;;  %1230 = vmatpush.msrb.mxu3 %v768_v34  ;;  %v2792_v11 = vld [vmem:[#allocation6 + $0x278] sm:$0xff] }
 0x176   :  { %1171 = vmatpush.msrb.mxu0 %v572_v60  ;;  %1191 = vmatpush.msrb.mxu1 %v636_v51  ;;  %3480 = vst [vmem:[#allocation37_spill] sm:$0xff] %v2792_v11  ;;  %v2794_v34 = vld [vmem:[#allocation6 + $0x378] sm:$0xff]  ;;  %v680_v60 = vunpack.c.l.bf16 %v2780_v46  ;;  %v744_v51 = vunpack.c.l.bf16 %v2782_v56 }
 0x177   :  { %1211 = vmatpush.msrb.mxu2 %v700_v4  ;;  %1231 = vmatpush.msrb.mxu3 %v764_v42  ;;  %3481 = vst [vmem:[#allocation24_spill] sm:$0xff] %v2794_v34  ;;  %v2798_v4 = vld [vmem:[#allocation6 + $0x68] sm:$0xff]  ;;  %v2840_v56 = vld [vmem:[#allocation6 + $0x238] sm:$0xff] }
 0x178   :  { %1172 = vmatpush.msrb.mxu0 %v568_v21  ;;  %1192 = vmatpush.msrb.mxu1 %v632_v27  ;;  %v2800_v42 = vld [vmem:[#allocation6 + $0x168] sm:$0xff]  ;;  %v548_v21 = vunpack.c.l.bf16 %v2786_v23  ;;  %v612_v27 = vunpack.c.l.bf16 %v2788_v24  ;;  %3488 = vst [vmem:[#allocation30_spill] sm:$0xff] %v2840_v56  ;;  %v2842_v46 = vld [vmem:[#allocation6 + $0x338] sm:$0xff] }
 0x179   :  { %1212 = vmatpush.msrb.mxu2 %v696_v10  ;;  %1232 = vmatpush.msrb.mxu3 %v760_v53  ;;  %v2804_v10 = vld [vmem:[#allocation6 + $0x268] sm:$0xff]  ;;  %3489 = vst [vmem:[#allocation31_spill] sm:$0xff] %v2842_v46 }
 0x17a   :  { %1173 = vmatpush.msrb.mxu0 %v564_v22  ;;  %1193 = vmatpush.msrb.mxu1 %v628_v62  ;;  %3482 = vst [vmem:[#allocation25_spill] sm:$0xff] %v2804_v10  ;;  %v2806_v53 = vld [vmem:[#allocation6 + $0x368] sm:$0xff]  ;;  %v676_v22 = vunpack.c.l.bf16 %v2792_v11  ;;  %v740_v62 = vunpack.c.l.bf16 %v2794_v34 }
 0x17b   :  { %1213 = vmatpush.msrb.mxu2 %v692_v29  ;;  %1233 = vmatpush.msrb.mxu3 %v756_v47  ;;  %3483 = vst [vmem:[#allocation38_spill] sm:$0xff] %v2806_v53  ;;  %v2810_v29 = vld [vmem:[#allocation6 + $0x58] sm:$0xff]  ;;  %v2828_v34 = vld [vmem:[#allocation6 + $0x248] sm:$0xff] }
 0x17c   :  { %1174 = vmatpush.msrb.mxu0 %v560_v8  ;;  %1194 = vmatpush.msrb.mxu1 %v624_v50  ;;  %v2812_v47 = vld [vmem:[#allocation6 + $0x158] sm:$0xff]  ;;  %v544_v8 = vunpack.c.l.bf16 %v2798_v4  ;;  %v608_v50 = vunpack.c.l.bf16 %v2800_v42  ;;  %3486 = vst [vmem:[#allocation28_spill] sm:$0xff] %v2828_v34  ;;  %v2830_v11 = vld [vmem:[#allocation6 + $0x348] sm:$0xff] }
 0x17d   :  { %1214 = vmatpush.msrb.mxu2 %v688_v59  ;;  %1234 = vmatpush.msrb.mxu3 %v752_v0  ;;  %v2816_v59 = vld [vmem:[#allocation6 + $0x258] sm:$0xff]  ;;  %3487 = vst [vmem:[#allocation29_spill] sm:$0xff] %v2830_v11 }
 0x17e   :  { %1175 = vmatpush.msrb.mxu0 %v556_v15  ;;  %1195 = vmatpush.msrb.mxu1 %v620_v40  ;;  %3484 = vst [vmem:[#allocation26_spill] sm:$0xff] %v2816_v59  ;;  %v2818_v0 = vld [vmem:[#allocation6 + $0x358] sm:$0xff]  ;;  %v672_v15 = vunpack.c.l.bf16 %v2804_v10  ;;  %v736_v40 = vunpack.c.l.bf16 %v2806_v53 }
 0x17f   :  { %1215 = vmatpush.msrb.mxu2 %v684_v63  ;;  %1235 = vmatpush.msrb.mxu3 %v748_v14  ;;  %3485 = vst [vmem:[#allocation27_spill] sm:$0xff] %v2818_v0  ;;  %v2822_v63 = vld [vmem:[#allocation6 + $0x48] sm:$0xff]  ;;  %v2834_v53 = vld [vmem:[#allocation6 + $0x38] sm:$0xff] }
 0x180   :  { %1176 = vmatpush.msrb.mxu0 %v552_v48  ;;  %1196 = vmatpush.msrb.mxu1 %v616_v38  ;;  %v2824_v14 = vld [vmem:[#allocation6 + $0x148] sm:$0xff]  ;;  %v540_v48 = vunpack.c.l.bf16 %v2810_v29  ;;  %v604_v38 = vunpack.c.l.bf16 %v2812_v47  ;;  %v2836_v10 = vld [vmem:[#allocation6 + $0x138] sm:$0xff] }
 0x181   :  { %1216 = vmatpush.msrb.mxu2 %v680_v60  ;;  %1236 = vmatpush.msrb.mxu3 %v744_v51  ;;  %v668_v60 = vunpack.c.l.bf16 %v2816_v59  ;;  %v732_v51 = vunpack.c.l.bf16 %v2818_v0  ;;  %v2846_v0 = vld [vmem:[#allocation6 + $0x28] sm:$0xff] }
 0x182   :  { %1177 = vmatpush.msrb.mxu0 %v548_v21  ;;  %1197 = vmatpush.msrb.mxu1 %v612_v27  ;;  %v536_v21 = vunpack.c.l.bf16 %v2822_v63  ;;  %v600_v27 = vunpack.c.l.bf16 %v2824_v14  ;;  %v2848_v59 = vld [vmem:[#allocation6 + $0x128] sm:$0xff] }
 0x183   :  { %1217 = vmatpush.msrb.mxu2 %v676_v22  ;;  %1237 = vmatpush.msrb.mxu3 %v740_v62  ;;  %v664_v22 = vunpack.c.l.bf16 %v2828_v34  ;;  %v728_v62 = vunpack.c.l.bf16 %v2830_v11  ;;  %v2858_v11 = vld [vmem:[#allocation6 + $0x18] sm:$0xff] }
 0x184   :  { %1178 = vmatpush.msrb.mxu0 %v544_v8  ;;  %1198 = vmatpush.msrb.mxu1 %v608_v50  ;;  %v532_v8 = vunpack.c.l.bf16 %v2834_v53  ;;  %v596_v50 = vunpack.c.l.bf16 %v2836_v10  ;;  %v2860_v34 = vld [vmem:[#allocation6 + $0x118] sm:$0xff] }
 0x185   :  { %1218 = vmatpush.msrb.mxu2 %v672_v15  ;;  %1238 = vmatpush.msrb.mxu3 %v736_v40  ;;  %v660_v15 = vunpack.c.l.bf16 %v2840_v56  ;;  %v724_v40 = vunpack.c.l.bf16 %v2842_v46  ;;  %v2870_v46 = vld [vmem:[#allocation6 + $0x8] sm:$0xff] }
 0x186   :  { %1179 = vmatpush.msrb.mxu0 %v540_v48  ;;  %1199 = vmatpush.msrb.mxu1 %v604_v38  ;;  %v528_v48 = vunpack.c.l.bf16 %v2846_v0  ;;  %v592_v38 = vunpack.c.l.bf16 %v2848_v59  ;;  %v2872_v56 = vld [vmem:[#allocation6 + $0x108] sm:$0xff] }
 0x187   :  { %1219 = vmatpush.msrb.mxu2 %v668_v60  ;;  %1239 = vmatpush.msrb.mxu3 %v732_v51  ;;  %v656_v60 = vunpack.c.l.bf16 %v2852_v2  ;;  %v720_v51 = vunpack.c.l.bf16 %v2854_v44  ;;  %v520_v44 = vunpack.c.l.bf16 %v2870_v46  ;;  %v712_v2 = vunpack.c.l.bf16 %v2878_v26 }
 0x188   :  { %1180 = vmatpush.msrb.mxu0 %v536_v21  ;;  %1200 = vmatpush.msrb.mxu1 %v600_v27  ;;  %v524_v21 = vunpack.c.l.bf16 %v2858_v11  ;;  %v588_v27 = vunpack.c.l.bf16 %v2860_v34  ;;  %v645_v26 = vunpack.c.h.bf16 %v2692_v19  ;;  %v641_v19 = vunpack.c.h.bf16 %v2700_v1 }
 0x189   :  { %1220 = vmatpush.msrb.mxu2 %v664_v22  ;;  %1240 = vmatpush.msrb.mxu3 %v728_v62  ;;  %v652_v22 = vunpack.c.l.bf16 %v2864_v28  ;;  %v716_v62 = vunpack.c.l.bf16 %v2866_v43 }
 0x18a   :  { %1181 = vmatpush.msrb.mxu0 %v532_v8  ;;  %1201 = vmatpush.msrb.mxu1 %v596_v50  ;;  %v584_v8 = vunpack.c.l.bf16 %v2872_v56  ;;  %v648_v50 = vunpack.c.l.bf16 %v2876_v9  ;;  %v2918_v9 = vld [vmem:[#allocation6 + $0x4b8] sm:$0xff] }
 0x18b   :  { %1221 = vmatpush.msrb.mxu2 %v660_v15  ;;  %1241 = vmatpush.msrb.mxu3 %v724_v40  ;;  %v2888_v15 = vld [vmem:[#allocation6 + $0x5f8] sm:$0xff]  ;;  %v2890_v40 = vld [vmem:[#allocation6 + $0x4e8] sm:$0xff] }
 0x18c   :  { %1182 = vmatpush.msrb.mxu0 %v528_v48  ;;  %1202 = vmatpush.msrb.mxu1 %v592_v38  ;;  %v2892_v48 = vld [vmem:[#allocation6 + $0x5e8] sm:$0xff]  ;;  %v836_v38 = vunpack.c.l.bf16 %v2886_v3 }
 0x18d   :  { %1222 = vmatpush.msrb.mxu2 %v656_v60  ;;  %1242 = vmatpush.msrb.mxu3 %v720_v51  ;;  %v900_v60 = vunpack.c.l.bf16 %v2888_v15  ;;  %v581_v51 = vunpack.c.h.bf16 %v2690_v16  ;;  %v577_v16 = vunpack.c.h.bf16 %v2698_v41  ;;  %v2920_v41 = vld [vmem:[#allocation6 + $0x5b8] sm:$0xff] }
 0x18e   :  { %1183 = vmatpush.msrb.mxu0 %v524_v21  ;;  %1203 = vmatpush.msrb.mxu1 %v588_v27  ;;  %v2898_v21 = vld [vmem:[#allocation6 + $0x4d8] sm:$0xff] }
 0x18f   :  { %1223 = vmatpush.msrb.mxu2 %v652_v22  ;;  %1243 = vmatpush.msrb.mxu3 %v716_v62  ;;  %v2900_v27 = vld [vmem:[#allocation6 + $0x5d8] sm:$0xff]  ;;  %v896_v22 = vunpack.c.l.bf16 %v2892_v48  ;;  %v2912_v62 = vld [vmem:[#allocation6 + $0x5c8] sm:$0xff] }
 0x190   :  { %1184 = vmatpush.msrb.mxu0 %v520_v44  ;;  %1204 = vmatpush.msrb.mxu1 %v584_v8  ;;  %v832_v44 = vunpack.c.l.bf16 %v2890_v40  ;;  %v828_v8 = vunpack.c.l.bf16 %v2898_v21 }
 0x191   :  { %1224 = vmatpush.msrb.mxu2 %v648_v50  ;;  %1244 = vmatpush.msrb.mxu3 %v712_v2  ;;  %v2910_v2 = vld [vmem:[#allocation6 + $0x4c8] sm:$0xff]  ;;  %v892_v50 = vunpack.c.l.bf16 %v2900_v27 }
 0x192   :  { %1185 = vmatmul.f32.vlgmr.msrb.gmra.mxu0 %v2610_v30  ;;  %1205 = vmatmul.f32.vlgmr.msrb.gmra.mxu1 %v2612_v25  ;;  %v824_v1 = vunpack.c.l.bf16 %v2910_v2 }
 0x193   :  { %1225 = vmatmul.f32.vlgmr.msrb.gmra.mxu2 %v2618_v33  ;;  %1245 = vmatmul.f32.vlgmr.msrb.gmra.mxu3 %v2620_v55  ;;  %v573_v33 = vunpack.c.h.bf16 %v2710_v12  ;;  %v637_v55 = vunpack.c.h.bf16 %v2712_v17  ;;  %v2928_v12 = vld [vmem:[#allocation6 + $0x5a8] sm:$0xff]  ;;  %v820_v17 = vunpack.c.l.bf16 %v2918_v9 }
 0x194   :  { %1249 = vmatpush.msra.mxu0 %v836_v38  ;;  %1269 = vmatpush.msra.mxu1 %v900_v60  ;;  %v888_v38 = vunpack.c.l.bf16 %v2912_v62  ;;  %v569_v60 = vunpack.c.h.bf16 %v2726_v35  ;;  %v2936_v35 = vld [vmem:[#allocation6 + $0x598] sm:$0xff] }
 0x195   :  { %1289 = vmatpush.msra.mxu2 %v581_v51  ;;  %1309 = vmatpush.msra.mxu3 %v645_v26  ;;  %v633_v26 = vunpack.c.h.bf16 %v2728_v32  ;;  %v2926_v51 = vld [vmem:[#allocation6 + $0x4a8] sm:$0xff] }
 0x196   :  { %1250 = vmatpush.msra.mxu0 %v832_v44  ;;  %1270 = vmatpush.msra.mxu1 %v896_v22  ;;  %v884_v44 = vunpack.c.l.bf16 %v2920_v41  ;;  %v565_v22 = vunpack.c.h.bf16 %v2738_v49  ;;  %v816_v32 = vunpack.c.l.bf16 %v2926_v51  ;;  %v2944_v49 = vld [vmem:[#allocation6 + $0x588] sm:$0xff] }
 0x197   :  { %1290 = vmatpush.msra.mxu2 %v577_v16  ;;  %1310 = vmatpush.msra.mxu3 %v641_v19  ;;  %v629_v16 = vunpack.c.h.bf16 %v2740_v36  ;;  %v2934_v19 = vld [vmem:[#allocation6 + $0x498] sm:$0xff] }
 0x198   :  { %1251 = vmatpush.msra.mxu0 %v828_v8  ;;  %1271 = vmatpush.msra.mxu1 %v892_v50  ;;  %v880_v8 = vunpack.c.l.bf16 %v2928_v12  ;;  %v561_v50 = vunpack.c.h.bf16 %v2750_v18  ;;  %v812_v36 = vunpack.c.l.bf16 %v2934_v19  ;;  %v2952_v18 = vld [vmem:[#allocation6 + $0x578] sm:$0xff] }
 0x199   :  { %1291 = vmatpush.msra.mxu2 %v573_v33  ;;  %1311 = vmatpush.msra.mxu3 %v637_v55  ;;  %v625_v33 = vunpack.c.h.bf16 %v2752_v39  ;;  %v2942_v55 = vld [vmem:[#allocation6 + $0x488] sm:$0xff] }
 0x19a   :  { %1252 = vmatpush.msra.mxu0 %v824_v1  ;;  %1272 = vmatpush.msra.mxu1 %v888_v38  ;;  %v876_v1 = vunpack.c.l.bf16 %v2936_v35  ;;  %v557_v38 = vunpack.c.h.bf16 %v2762_v13  ;;  %v808_v39 = vunpack.c.l.bf16 %v2942_v55  ;;  %v2960_v13 = vld [vmem:[#allocation6 + $0x568] sm:$0xff] }
 0x19b   :  { %1292 = vmatpush.msra.mxu2 %v569_v60  ;;  %1312 = vmatpush.msra.mxu3 %v633_v26  ;;  %v621_v60 = vunpack.c.h.bf16 %v2764_v5  ;;  %v2950_v26 = vld [vmem:[#allocation6 + $0x478] sm:$0xff] }
 0x19c   :  { %1253 = vmatpush.msra.mxu0 %v820_v17  ;;  %1273 = vmatpush.msra.mxu1 %v884_v44  ;;  %v872_v17 = vunpack.c.l.bf16 %v2944_v49  ;;  %v553_v44 = vunpack.c.h.bf16 %v2774_v7  ;;  %v804_v5 = vunpack.c.l.bf16 %v2950_v26  ;;  %v2968_v7 = vld [vmem:[#allocation6 + $0x558] sm:$0xff] }
 0x19d   :  { %1293 = vmatpush.msra.mxu2 %v565_v22  ;;  %1313 = vmatpush.msra.mxu3 %v629_v16  ;;  %v617_v22 = vunpack.c.h.bf16 %v2776_v45  ;;  %v2958_v16 = vld [vmem:[#allocation6 + $0x468] sm:$0xff] }
 0x19e   :  { %1254 = vmatpush.msra.mxu0 %v816_v32  ;;  %1274 = vmatpush.msra.mxu1 %v880_v8  ;;  %v868_v32 = vunpack.c.l.bf16 %v2952_v18  ;;  %v549_v8 = vunpack.c.h.bf16 %v2786_v23  ;;  %v800_v45 = vunpack.c.l.bf16 %v2958_v16  ;;  %v2976_v23 = vld [vmem:[#allocation6 + $0x548] sm:$0xff] }
 0x19f   :  { %1294 = vmatpush.msra.mxu2 %v561_v50  ;;  %1314 = vmatpush.msra.mxu3 %v625_v33  ;;  %v613_v50 = vunpack.c.h.bf16 %v2788_v24  ;;  %v2966_v33 = vld [vmem:[#allocation6 + $0x458] sm:$0xff] }
 0x1a0   :  { %1255 = vmatpush.msra.mxu0 %v812_v36  ;;  %1275 = vmatpush.msra.mxu1 %v876_v1  ;;  %v864_v36 = vunpack.c.l.bf16 %v2960_v13  ;;  %v545_v1 = vunpack.c.h.bf16 %v2798_v4  ;;  %v796_v24 = vunpack.c.l.bf16 %v2966_v33  ;;  %v2984_v4 = vld [vmem:[#allocation6 + $0x538] sm:$0xff] }
 0x1a1   :  { %1295 = vmatpush.msra.mxu2 %v557_v38  ;;  %1315 = vmatpush.msra.mxu3 %v621_v60  ;;  %v609_v38 = vunpack.c.h.bf16 %v2800_v42  ;;  %v2974_v60 = vld [vmem:[#allocation6 + $0x448] sm:$0xff] }
 0x1a2   :  { %1256 = vmatpush.msra.mxu0 %v808_v39  ;;  %1276 = vmatpush.msra.mxu1 %v872_v17  ;;  %v860_v39 = vunpack.c.l.bf16 %v2968_v7  ;;  %v541_v17 = vunpack.c.h.bf16 %v2810_v29  ;;  %v792_v42 = vunpack.c.l.bf16 %v2974_v60  ;;  %v2992_v29 = vld [vmem:[#allocation6 + $0x528] sm:$0xff] }
 0x1a3   :  { %1296 = vmatpush.msra.mxu2 %v553_v44  ;;  %1316 = vmatpush.msra.mxu3 %v617_v22  ;;  %v605_v44 = vunpack.c.h.bf16 %v2812_v47  ;;  %v2982_v22 = vld [vmem:[#allocation6 + $0x438] sm:$0xff] }
 0x1a4   :  { %1257 = vmatpush.msra.mxu0 %v804_v5  ;;  %1277 = vmatpush.msra.mxu1 %v868_v32  ;;  %v856_v5 = vunpack.c.l.bf16 %v2976_v23  ;;  %v537_v32 = vunpack.c.h.bf16 %v2822_v63  ;;  %v788_v47 = vunpack.c.l.bf16 %v2982_v22  ;;  %v3000_v63 = vld [vmem:[#allocation6 + $0x518] sm:$0xff] }
 0x1a5   :  { %1297 = vmatpush.msra.mxu2 %v549_v8  ;;  %1317 = vmatpush.msra.mxu3 %v613_v50  ;;  %v601_v8 = vunpack.c.h.bf16 %v2824_v14  ;;  %v2990_v50 = vld [vmem:[#allocation6 + $0x428] sm:$0xff] }
 0x1a6   :  { %1258 = vmatpush.msra.mxu0 %v800_v45  ;;  %1278 = vmatpush.msra.mxu1 %v864_v36  ;;  %v852_v45 = vunpack.c.l.bf16 %v2984_v4  ;;  %v533_v36 = vunpack.c.h.bf16 %v2834_v53  ;;  %v784_v14 = vunpack.c.l.bf16 %v2990_v50  ;;  %v3008_v53 = vld [vmem:[#allocation6 + $0x508] sm:$0xff] }
 0x1a7   :  { %1298 = vmatpush.msra.mxu2 %v545_v1  ;;  %1318 = vmatpush.msra.mxu3 %v609_v38  ;;  %v597_v1 = vunpack.c.h.bf16 %v2836_v10  ;;  %v2998_v38 = vld [vmem:[#allocation6 + $0x418] sm:$0xff] }
 0x1a8   :  { %1259 = vmatpush.msra.mxu0 %v796_v24  ;;  %1279 = vmatpush.msra.mxu1 %v860_v39  ;;  %v848_v24 = vunpack.c.l.bf16 %v2992_v29  ;;  %v529_v39 = vunpack.c.h.bf16 %v2846_v0  ;;  %v780_v10 = vunpack.c.l.bf16 %v2998_v38  ;;  %v840_v0 = vunpack.c.l.bf16 %v3008_v53 }
 0x1a9   :  { %1299 = vmatpush.msra.mxu2 %v541_v17  ;;  %1319 = vmatpush.msra.mxu3 %v605_v44  ;;  %v593_v17 = vunpack.c.h.bf16 %v2848_v59  ;;  %v3006_v44 = vld [vmem:[#allocation6 + $0x408] sm:$0xff] }
 0x1aa   :  { %1260 = vmatpush.msra.mxu0 %v792_v42  ;;  %1280 = vmatpush.msra.mxu1 %v856_v5  ;;  %v844_v42 = vunpack.c.l.bf16 %v3000_v63  ;;  %v525_v5 = vunpack.c.h.bf16 %v2858_v11  ;;  %v776_v59 = vunpack.c.l.bf16 %v3006_v44  ;;  %v709_v11 = vunpack.c.h.bf16 %v2694_v57 }
 0x1ab   :  { %1300 = vmatpush.msra.mxu2 %v537_v32  ;;  %1320 = vmatpush.msra.mxu3 %v601_v8  ;;  %v589_v32 = vunpack.c.h.bf16 %v2860_v34  ;;  %v521_v8 = vunpack.c.h.bf16 %v2870_v46  ;;  %v773_v34 = vunpack.c.h.bf16 %v2696_v6  ;;  %v705_v46 = vunpack.c.h.bf16 %v2704_v52 }
 0x1ac   :  { %1261 = vmatpush.msra.mxu0 %v788_v47  ;;  %1281 = vmatpush.msra.mxu1 %v852_v45  ;;  %v585_v47 = vunpack.c.h.bf16 %v2872_v56  ;;  %v837_v45 = vunpack.c.h.bf16 %v2886_v3  ;;  %v769_v56 = vunpack.c.h.bf16 %v2706_v20  ;;  %v833_v57 = vunpack.c.h.bf16 %v2890_v40 }
 0x1ad   :  { %1301 = vmatpush.msra.mxu2 %v533_v36  ;;  %1321 = vmatpush.msra.mxu3 %v597_v1  ;;  %v901_v36 = vunpack.c.h.bf16 %v2888_v15  ;;  %v897_v6 = vunpack.c.h.bf16 %v2892_v48  ;;  %v701_v3 = vunpack.c.h.bf16 %v2718_v31  ;;  %v893_v52 = vunpack.c.h.bf16 %v2900_v27  ;;  %v3496_v48 = vld [vmem:[#allocation18_spill] sm:$0xff]  ;;  %v3497_v1 = vld [vmem:[#allocation19_spill] sm:$0xff] }
 0x1ae   :  { %1262 = vmatpush.msra.mxu0 %v784_v14  ;;  %1282 = vmatpush.msra.mxu1 %v848_v24  ;;  %v825_v15 = vunpack.c.h.bf16 %v2910_v2  ;;  %v889_v31 = vunpack.c.h.bf16 %v2912_v62  ;;  %v821_v27 = vunpack.c.h.bf16 %v2918_v9  ;;  %v689_v14 = vunpack.c.h.bf16 %v3497_v1  ;;  %v3498_v24 = vld [vmem:[#allocation20_spill] sm:$0xff] }
 0x1af   :  { %1302 = vmatpush.msra.mxu2 %v529_v39  ;;  %1322 = vmatpush.msra.mxu3 %v593_v17  ;;  %v753_v2 = vunpack.c.h.bf16 %v3498_v24  ;;  %v817_v62 = vunpack.c.h.bf16 %v2926_v51  ;;  %v881_v39 = vunpack.c.h.bf16 %v2928_v12  ;;  %v3499_v17 = vld [vmem:[#allocation21_spill] sm:$0xff]  ;;  %v809_v12 = vunpack.c.h.bf16 %v2942_v55  ;;  %v3515_v24 = vld [vmem:[#allocation34_spill] sm:$0xff] }
 0x1b0   :  { %1263 = vmatpush.msra.mxu0 %v780_v10  ;;  %1283 = vmatpush.msra.mxu1 %v844_v42  ;;  %v685_v10 = vunpack.c.h.bf16 %v3499_v17  ;;  %v3500_v42 = vld [vmem:[#allocation36_spill] sm:$0xff]  ;;  %v653_v1 = vunpack.c.h.bf16 %v2864_v28  ;;  %v841_v28 = vunpack.c.h.bf16 %v3008_v53 }
 0x1b1   :  { %1303 = vmatpush.msra.mxu2 %v525_v5  ;;  %1323 = vmatpush.msra.mxu3 %v589_v32  ;;  %v749_v9 = vunpack.c.h.bf16 %v3500_v42  ;;  %v877_v5 = vunpack.c.h.bf16 %v2936_v35  ;;  %v3501_v32 = vld [vmem:[#allocation22_spill] sm:$0xff]  ;;  %v805_v35 = vunpack.c.h.bf16 %v2950_v26  ;;  %v3096_v53 = vld [vmem:[#allocation8 + $0x68] sm:$0xff]  ;;  %v2030_v42 = vld.sshfl [vmem:[#allocation1 + $0x10] sm:$0xff pattern:$0x73625140] }
 0x1b2   :  { %1264 = vmatpush.msra.mxu0 %v776_v59  ;;  %1284 = vmatpush.msra.mxu1 %v840_v0  ;;  %v681_v59 = vunpack.c.h.bf16 %v3501_v32  ;;  %v3502_v0 = vld [vmem:[#allocation23_spill] sm:$0xff]  ;;  %v2032_v32 = vld.sshfl [vmem:[#allocation1 + $0x20] sm:$0xff pattern:$0x73625140] }
 0x1b3   :  { %1304 = vmatpush.msra.mxu2 %v521_v8  ;;  %1324 = vmatpush.msra.mxu3 %v585_v47  ;;  %v745_v51 = vunpack.c.h.bf16 %v3502_v0  ;;  %v873_v8 = vunpack.c.h.bf16 %v2944_v49  ;;  %v3503_v47 = vld [vmem:[#allocation37_spill] sm:$0xff]  ;;  %v801_v49 = vunpack.c.h.bf16 %v2958_v16  ;;  %v3102_v0 = vld [vmem:[#allocation8 + $0x60] sm:$0xff] }
 0x1b4   :  { %1265 = vmatmul.f32.vlgmr.msra.gmra.mxu0 %v2638_v37  ;;  %1285 = vmatmul.f32.vlgmr.msra.gmra.mxu1 %v2640_v61  ;;  %v765_v37 = vunpack.c.h.bf16 %v2720_v58  ;;  %v829_v61 = vunpack.c.h.bf16 %v2898_v21  ;;  %v3495_v58 = vld [vmem:[#allocation17_spill] sm:$0xff]  ;;  %v757_v21 = vunpack.c.h.bf16 %v3496_v48  ;;  %v3513_v48 = vld [vmem:[#allocation32_spill] sm:$0xff] }
 0x1b5   :  { %1305 = vmatmul.f32.vlgmr.msra.gmra.mxu2 %v2610_v30  ;;  %1325 = vmatmul.f32.vlgmr.msra.gmra.mxu3 %v2612_v25  ;;  %v697_v30 = vunpack.c.h.bf16 %v2732_v54  ;;  %v3494_v25 = vld [vmem:[#allocation16_spill] sm:$0xff]  ;;  %v693_v40 = vunpack.c.h.bf16 %v3495_v58  ;;  %v885_v54 = vunpack.c.h.bf16 %v2920_v41  ;;  %v813_v41 = vunpack.c.h.bf16 %v2934_v19  ;;  %v3512_v58 = vld [vmem:[#allocation31_spill] sm:$0xff] }
 0x1b6   :  { %1329 = vmatpush.msrb.mxu0 %v709_v11  ;;  %1349 = vmatpush.msrb.mxu1 %v773_v34  ;;  %v761_v20 = vunpack.c.h.bf16 %v3494_v25  ;;  %v677_v11 = vunpack.c.h.bf16 %v3503_v47  ;;  %v3504_v34 = vld [vmem:[#allocation24_spill] sm:$0xff]  ;;  %v3510_v25 = vld [vmem:[#allocation29_spill] sm:$0xff] }
 0x1b7   :  { %1369 = vmatpush.msrb.mxu2 %v837_v45  ;;  %1389 = vmatpush.msrb.mxu3 %v901_v36  ;;  %v741_v19 = vunpack.c.h.bf16 %v3504_v34  ;;  %v869_v45 = vunpack.c.h.bf16 %v2952_v18  ;;  %v3505_v36 = vld [vmem:[#allocation25_spill] sm:$0xff]  ;;  %v797_v18 = vunpack.c.h.bf16 %v2966_v33  ;;  %v729_v16 = vunpack.c.h.bf16 %v3510_v25  ;;  %v3115_v34 = vld [vmem:[#allocation8 + $0xd8] sm:$0xff] }
 0x1b8   :  { %1330 = vmatpush.msrb.mxu0 %v705_v46  ;;  %1350 = vmatpush.msrb.mxu1 %v769_v56  ;;  %v673_v46 = vunpack.c.h.bf16 %v3505_v36  ;;  %v3506_v56 = vld [vmem:[#allocation38_spill] sm:$0xff]  ;;  %v725_v33 = vunpack.c.h.bf16 %v3512_v58 }
 0x1b9   :  { %1370 = vmatpush.msrb.mxu2 %v833_v57  ;;  %1390 = vmatpush.msrb.mxu3 %v897_v6  ;;  %v737_v55 = vunpack.c.h.bf16 %v3506_v56  ;;  %v865_v57 = vunpack.c.h.bf16 %v2960_v13  ;;  %v3507_v6 = vld [vmem:[#allocation26_spill] sm:$0xff]  ;;  %v793_v13 = vunpack.c.h.bf16 %v2974_v60 }
 0x1ba   :  { %1331 = vmatpush.msrb.mxu0 %v701_v3  ;;  %1351 = vmatpush.msrb.mxu1 %v765_v37  ;;  %v669_v3 = vunpack.c.h.bf16 %v3507_v6  ;;  %v3508_v37 = vld [vmem:[#allocation27_spill] sm:$0xff]  ;;  %v3122_v56 = vld [vmem:[#allocation8 + $0xd0] sm:$0xff]  ;;  %v3126_v6 = vld [vmem:[#allocation8 + $0x48] sm:$0xff] }
 0x1bb   :  { %1371 = vmatpush.msrb.mxu2 %v829_v61  ;;  %1391 = vmatpush.msrb.mxu3 %v893_v52  ;;  %v733_v26 = vunpack.c.h.bf16 %v3508_v37  ;;  %v861_v61 = vunpack.c.h.bf16 %v2968_v7  ;;  %v3509_v52 = vld [vmem:[#allocation28_spill] sm:$0xff]  ;;  %v789_v7 = vunpack.c.h.bf16 %v2982_v22  ;;  %v717_v22 = vunpack.c.h.bf16 %v2866_v43  ;;  %v3088_v43 = vld [vmem:[#allocation8 + $0xf8] sm:$0xff] }
 0x1bc   :  { %1332 = vmatpush.msrb.mxu0 %v697_v30  ;;  %1352 = vmatpush.msrb.mxu1 %v761_v20  ;;  %v665_v30 = vunpack.c.h.bf16 %v3509_v52  ;;  %v857_v20 = vunpack.c.h.bf16 %v2976_v23  ;;  %v785_v23 = vunpack.c.h.bf16 %v2990_v50  ;;  %v3134_v52 = vld [vmem:[#allocation8 + $0xc0] sm:$0xff]  ;;  %v1495_v25 = vunpack.c.l.bf16 %v3126_v6 }
 0x1bd   :  { %1372 = vmatpush.msrb.mxu2 %v825_v15  ;;  %1392 = vmatpush.msrb.mxu3 %v889_v31  ;;  %v3511_v15 = vld [vmem:[#allocation30_spill] sm:$0xff]  ;;  %v1525_v58 = vunpack.c.l.bf16 %v3134_v52 }
 0x1be   :  { %1333 = vmatpush.msrb.mxu0 %v693_v40  ;;  %1353 = vmatpush.msrb.mxu1 %v757_v21  ;;  %v661_v31 = vunpack.c.h.bf16 %v3511_v15  ;;  %v853_v40 = vunpack.c.h.bf16 %v2984_v4  ;;  %v657_v21 = vunpack.c.h.bf16 %v3513_v48  ;;  %v781_v4 = vunpack.c.h.bf16 %v2998_v38  ;;  %v3090_v38 = vld [vmem:[#allocation8 + $0x70] sm:$0xff] }
 0x1bf   :  { %1373 = vmatpush.msrb.mxu2 %v821_v27  ;;  %1393 = vmatpush.msrb.mxu3 %v885_v54  ;;  %v3514_v27 = vld [vmem:[#allocation33_spill] sm:$0xff]  ;;  %v849_v54 = vunpack.c.h.bf16 %v2992_v29  ;;  %v777_v29 = vunpack.c.h.bf16 %v3006_v44  ;;  %v1539_v44 = vunpack.c.l.bf16 %v3088_v43 }
 0x1c0   :  { %1334 = vmatpush.msrb.mxu0 %v689_v14  ;;  %1354 = vmatpush.msrb.mxu1 %v753_v2  ;;  %v721_v60 = vunpack.c.h.bf16 %v3514_v27  ;;  %v845_v14 = vunpack.c.h.bf16 %v3000_v63  ;;  %v649_v2 = vunpack.c.h.bf16 %v3515_v24  ;;  %v3092_v63 = vld [vmem:[#allocation8 + $0xf0] sm:$0xff] }
 0x1c1   :  { %1374 = vmatpush.msrb.mxu2 %v817_v62  ;;  %1394 = vmatpush.msrb.mxu3 %v881_v39  ;;  %v3516_v62 = vld [vmem:[#allocation35_spill] sm:$0xff] }
 0x1c2   :  { %1335 = vmatpush.msrb.mxu0 %v685_v10  ;;  %1355 = vmatpush.msrb.mxu1 %v749_v9  ;;  %v713_v50 = vunpack.c.h.bf16 %v3516_v62  ;;  %v3086_v39 = vld [vmem:[#allocation8 + $0x78] sm:$0xff]  ;;  %v3098_v10 = vld [vmem:[#allocation8 + $0xe8] sm:$0xff]  ;;  %v3160_v62 = vld [vmem:[#allocation8 + $0x20] sm:$0xff] }
 0x1c3   :  { %1375 = vmatpush.msrb.mxu2 %v813_v41  ;;  %1395 = vmatpush.msrb.mxu3 %v877_v5  ;;  %v1507_v17 = vunpack.c.l.bf16 %v3086_v39  ;;  %v2031_v9 = vld.sshfl [vmem:[#allocation1 + $0x18] sm:$0xff pattern:$0x73625140]  ;;  %v1505_v41 = vunpack.c.l.bf16 %v3090_v38  ;;  %v1537_v5 = vunpack.c.l.bf16 %v3092_v63  ;;  %v1535_v47 = vunpack.c.l.bf16 %v3098_v10 }
 0x1c4   :  { %1336 = vmatpush.msrb.mxu0 %v681_v59  ;;  %1356 = vmatpush.msrb.mxu1 %v745_v51  ;;  %v2033_v59 = vld.sshfl [vmem:[#allocation1 + $0x28] sm:$0xff pattern:$0x73625140]  ;;  %v3104_v51 = vld [vmem:[#allocation8 + $0xe0] sm:$0xff] }
 0x1c5   :  { %1376 = vmatpush.msrb.mxu2 %v809_v12  ;;  %1396 = vmatpush.msrb.mxu3 %v873_v8  ;;  %v3109_v12 = vld [vmem:[%s3371_s3] sm:$0xf]  ;;  %v1503_v8 = vunpack.c.l.bf16 %v3096_v53 }
 0x1c6   :  { %1337 = vmatpush.msrb.mxu0 %v677_v11  ;;  %1357 = vmatpush.msrb.mxu1 %v741_v19  ;;  %v3113_v11 = vld [vmem:[#allocation8 + $0x58] sm:$0xff]  ;;  %v1501_v19 = vunpack.c.l.bf16 %v3102_v0 }
 0x1c7   :  { %1377 = vmatpush.msrb.mxu2 %v805_v35  ;;  %1397 = vmatpush.msrb.mxu3 %v869_v45  ;;  %v1533_v35 = vunpack.c.l.bf16 %v3104_v51  ;;  %v904_v45 = vperm.slane %v3109_v12, 0 }
 0x1c8   :  { %1338 = vmatpush.msrb.mxu0 %v673_v46  ;;  %1358 = vmatpush.msrb.mxu1 %v737_v55  ;;  %v3120_v46 = vld [vmem:[#allocation8 + $0x50] sm:$0xff] }
 0x1c9   :  { %1378 = vmatpush.msrb.mxu2 %v801_v49  ;;  %1398 = vmatpush.msrb.mxu3 %v865_v57  ;;  %v946_v36 = vpop.f32.mrf.mxu0  ;;  %v1499_v49 = vunpack.c.l.bf16 %v3113_v11  ;;  %v1531_v57 = vunpack.c.l.bf16 %v3115_v34  ;;  %v1497_v37 = vunpack.c.l.bf16 %v3120_v46 }
 0x1ca   :  { %1339 = vmatpush.msrb.mxu0 %v669_v3  ;;  %1359 = vmatpush.msrb.mxu1 %v733_v26  ;;  %v3128_v3 = vld [vmem:[#allocation8 + $0xc8] sm:$0xff]  ;;  %v1529_v26 = vunpack.c.l.bf16 %v3122_v56 }
 0x1cb   :  { %1379 = vmatpush.msrb.mxu2 %v797_v18  ;;  %1399 = vmatpush.msrb.mxu3 %v861_v61  ;;  %v947_v18 = vadd.f32 %v946_v36, %v904_v45  ;;  %v3132_v61 = vld [vmem:[#allocation8 + $0x40] sm:$0xff]  ;;  %v3180_v45 = vld [vmem:[#allocation8 + $0x90] sm:$0xff] }
 0x1cc   :  { %1340 = vmatpush.msrb.mxu0 %v665_v30  ;;  %1360 = vmatpush.msrb.mxu1 %v729_v16  ;;  %v966_v30 = vpop.f32.mrf.mxu1  ;;  %v1527_v16 = vunpack.c.l.bf16 %v3128_v3  ;;  %v3182_v36 = vld [vmem:[#allocation8 + $0x160] sm:$0xff] }
 0x1cd   :  { %1380 = vmatpush.msrb.mxu2 %v793_v13  ;;  %1400 = vmatpush.msrb.mxu3 %v857_v20  ;;  %v3138_v13 = vld [vmem:[#allocation8 + $0x38] sm:$0xff] }
 0x1ce   :  { %1341 = vmatpush.msrb.mxu0 %v661_v31  ;;  %1361 = vmatpush.msrb.mxu1 %v725_v33  ;;  %v3140_v20 = vld [vmem:[#allocation8 + $0xb8] sm:$0xff]  ;;  %v1493_v31 = vunpack.c.l.bf16 %v3132_v61  ;;  %v967_v33 = vadd.f32 %v966_v30, %v947_v18  ;;  %v1491_v48 = vunpack.c.l.bf16 %v3138_v13  ;;  %v3187_v30 = vld [vmem:[#allocation8 + $0x8] sm:$0xff] }
 0x1cf   :  { %1381 = vmatpush.msrb.mxu2 %v789_v7  ;;  %1401 = vmatpush.msrb.mxu3 %v853_v40  ;;  %v3144_v7 = vld [vmem:[#allocation8 + $0x30] sm:$0xff] }
 0x1d0   :  { %1342 = vmatpush.msrb.mxu0 %v657_v21  ;;  %1362 = vmatpush.msrb.mxu1 %v721_v60  ;;  %v986_v55 = vpop.f32.mrf.mxu2  ;;  %v1006_v15 = vpop.f32.mrf.mxu3  ;;  %v3146_v40 = vld [vmem:[#allocation8 + $0xb0] sm:$0xff]  ;;  %v1523_v21 = vunpack.c.l.bf16 %v3140_v20 }
 0x1d1   :  { %1382 = vmatpush.msrb.mxu2 %v785_v23  ;;  %1402 = vmatpush.msrb.mxu3 %v849_v54  ;;  %v987_v27 = vadd.f32 %v986_v55, %v967_v33  ;;  %v905_v23 = vperm.slane %v3109_v12, 1  ;;  %v3151_v54 = vld [vmem:[#allocation8 + $0x28] sm:$0xff]  ;;  %v1521_v24 = vunpack.c.l.bf16 %v3146_v40 }
 0x1d2   :  { %1343 = vmatpush.msrb.mxu0 %v653_v1  ;;  %1363 = vmatpush.msrb.mxu1 %v717_v22  ;;  %v3153_v1 = vld [vmem:[#allocation8 + $0xa8] sm:$0xff]  ;;  %v3155_v22 = vld [vmem:[#allocation8 + $0x178] sm:$0xff] }
 0x1d3   :  { %1383 = vmatpush.msrb.mxu2 %v781_v4  ;;  %1403 = vmatpush.msrb.mxu3 %v845_v14  ;;  %v1026_v60 = vpop.f32.mrf.mxu0  ;;  %v1489_v14 = vunpack.c.l.bf16 %v3144_v7 }
 0x1d4   :  { %1344 = vmatpush.msrb.mxu0 %v649_v2  ;;  %1364 = vmatpush.msrb.mxu1 %v713_v50  ;;  %v1571_v2 = vunpack.c.l.bf16 %v3155_v22  ;;  %v3162_v50 = vld [vmem:[#allocation8 + $0xa0] sm:$0xff] }
 0x1d5   :  { %1384 = vmatpush.msrb.mxu2 %v777_v29  ;;  %1404 = vmatpush.msrb.mxu3 %v841_v28  ;;  %v3164_v29 = vld [vmem:[#allocation8 + $0x170] sm:$0xff]  ;;  %v1487_v28 = vunpack.c.l.bf16 %v3151_v54 }
 0x1d6   :  { %1345 = vmatmul.f32.vlgmr.msrb.gmra.mxu0 %v2030_v42  ;;  %1365 = vmatmul.f32.vlgmr.msrb.gmra.mxu1 %v2031_v9  ;;  %v1007_v42 = vadd.f32 %v1006_v15, %v987_v27  ;;  %v3191_v15 = vld [vmem:[#allocation8 + $0x158] sm:$0xff] }
 0x1d7   :  { %1385 = vmatmul.f32.vlgmr.msrb.gmra.mxu2 %v2032_v32  ;;  %1405 = vmatmul.f32.vlgmr.msrb.gmra.mxu3 %v2033_v59  ;;  %v3173_v32 = vld [vmem:[#allocation8 + $0x168] sm:$0xff]  ;;  %v1046_v59 = vpop.f32.mrf.mxu1  ;;  %v1563_v33 = vunpack.c.l.bf16 %v3191_v15 }
 0x1d8   :  { %1611 = vmatpush.msra.mxu0 %v1507_v17  ;;  %1631 = vmatpush.msra.mxu1 %v1539_v44  ;;  %v1519_v17 = vunpack.c.l.bf16 %v3153_v1  ;;  %v1569_v44 = vunpack.c.l.bf16 %v3164_v29 }
 0x1d9   :  { %1651 = vmatpush.msra.mxu2 %v1571_v2  ;;  %v3207_v2 = vld [vmem:[#allocation8 + $0x148] sm:$0xff] }
 0x1da   :  { %1612 = vmatpush.msra.mxu0 %v1505_v41  ;;  %1632 = vmatpush.msra.mxu1 %v1537_v5  ;;  %v1066_v4 = vpop.f32.mrf.mxu2  ;;  %v3169_v41 = vld [vmem:[#allocation8 + $0x18] sm:$0xff]  ;;  %v1086_v55 = vpop.f32.mrf.mxu3 }
 0x1db   :  { %v1067_v9 = vadd.f32 %v1066_v4, %v905_v23  ;;  %v3171_v5 = vld [vmem:[#allocation8 + $0x98] sm:$0xff]  ;;  %1652 = vmatpush.msra.mxu2 %v1569_v44  ;;  %v1479_v23 = vunpack.c.l.bf16 %v3187_v30 }
 0x1dc   :  { %1613 = vmatpush.msra.mxu0 %v1503_v8  ;;  %1633 = vmatpush.msra.mxu1 %v1535_v47  ;;  %v1485_v8 = vunpack.c.l.bf16 %v3160_v62  ;;  %v1517_v47 = vunpack.c.l.bf16 %v3162_v50 }
 0x1dd   :  { %v1087_v18 = vadd.f32 %v1086_v55, %v1067_v9  ;;  %v1540_v9 = vunpack.c.h.bf16 %v3088_v43  ;;  %v1506_v43 = vunpack.c.h.bf16 %v3090_v38  ;;  %v1534_v38 = vunpack.c.h.bf16 %v3104_v51  ;;  %v3244_v51 = vld [vmem:[#allocation8 + $0x1f0] sm:$0xff] }
 0x1de   :  { %1614 = vmatpush.msra.mxu0 %v1501_v19  ;;  %1634 = vmatpush.msra.mxu1 %v1533_v35  ;;  %v1567_v19 = vunpack.c.l.bf16 %v3173_v32  ;;  %v3178_v35 = vld [vmem:[#allocation8 + $0x10] sm:$0xff] }
 0x1e0   :  { %1615 = vmatpush.msra.mxu0 %v1499_v49  ;;  %1635 = vmatpush.msra.mxu1 %v1531_v57  ;;  %v1483_v49 = vunpack.c.l.bf16 %v3169_v41  ;;  %v1515_v57 = vunpack.c.l.bf16 %v3171_v5 }
 0x1e1   :  { %1653 = vmatpush.msra.mxu2 %v1567_v19 }
 0x1e2   :  { %1616 = vmatpush.msra.mxu0 %v1497_v37  ;;  %1636 = vmatpush.msra.mxu1 %v1529_v26  ;;  %v1565_v37 = vunpack.c.l.bf16 %v3182_v36  ;;  %v1027_v26 = vadd.f32 %v1026_v60, %v1007_v42  ;;  %v3200_v60 = vld [vmem:[#allocation8 + $0x150] sm:$0xff]  ;;  %v1559_v42 = vunpack.c.l.bf16 %v3207_v2 }
 0x1e4   :  { %1617 = vmatpush.msra.mxu0 %v1495_v25  ;;  %1637 = vmatpush.msra.mxu1 %v1527_v16  ;;  %v3189_v25 = vld [vmem:[#allocation8 + $0x88] sm:$0xff] }
 0x1e5   :  { %1654 = vmatpush.msra.mxu2 %v1565_v37  ;;  %v1511_v4 = vunpack.c.l.bf16 %v3189_v25 }
 0x1e6   :  { %1618 = vmatpush.msra.mxu0 %v1493_v31  ;;  %1638 = vmatpush.msra.mxu1 %v1525_v58  ;;  %v1481_v31 = vunpack.c.l.bf16 %v3178_v35  ;;  %v1513_v58 = vunpack.c.l.bf16 %v3180_v45 }
 0x1e7   :  { %1655 = vmatpush.msra.mxu2 %v1563_v33  ;;  %v3231_v33 = vld [vmem:[#allocation8 + $0x128] sm:$0xff] }
 0x1e8   :  { %1619 = vmatpush.msra.mxu0 %v1491_v48  ;;  %1639 = vmatpush.msra.mxu1 %v1523_v21  ;;  %v3196_v48 = vld [vmem:[#allocation8] sm:$0xff] }
 0x1e9   :  { %v3198_v21 = vld [vmem:[#allocation8 + $0x80] sm:$0xff] }
 0x1ea   :  { %1620 = vmatpush.msra.mxu0 %v1489_v14  ;;  %1640 = vmatpush.msra.mxu1 %v1521_v24  ;;  %v1561_v14 = vunpack.c.l.bf16 %v3200_v60  ;;  %v3205_v24 = vadd.f32 %v1046_v59, %v1027_v26  ;;  %v1508_v59 = vunpack.c.h.bf16 %v3086_v39  ;;  %v3219_v26 = vld [vmem:[#allocation8 + $0x138] sm:$0xff]  ;;  %v1536_v39 = vunpack.c.h.bf16 %v3098_v10 }
 0x1eb   :  { %v1502_v10 = vunpack.c.h.bf16 %v3102_v0  ;;  %v3251_v0 = vld [vmem:[#allocation8 + $0x118] sm:$0xff] }
 0x1ec   :  { %1621 = vmatpush.msra.mxu0 %v1487_v28  ;;  %1641 = vmatpush.msra.mxu1 %v1519_v17  ;;  %v1477_v28 = vunpack.c.l.bf16 %v3196_v48  ;;  %v1509_v17 = vunpack.c.l.bf16 %v3198_v21 }
 0x1ed   :  { %v1106_v16 = vpop.f32.mrf.mxu0  ;;  %v1126_v44 = vpop.f32.mrf.mxu1  ;;  %1656 = vmatpush.msra.mxu2 %v1561_v14  ;;  %v3239_v14 = vld [vmem:[#allocation8 + $0x1f8] sm:$0xff] }
 0x1ee   :  { %1622 = vmatpush.msra.mxu0 %v1485_v8  ;;  %1642 = vmatpush.msra.mxu1 %v1517_v47  ;;  %v1107_v27 = vadd.f32 %v1106_v16, %v1087_v18  ;;  %v3213_v47 = vld [vmem:[#allocation8 + $0x140] sm:$0xff]  ;;  %v1555_v16 = vunpack.c.l.bf16 %v3219_v26 }
 0x1ef   :  { %v1557_v55 = vunpack.c.l.bf16 %v3213_v47  ;;  %1657 = vmatpush.msra.mxu2 %v1559_v42  ;;  %v1500_v42 = vunpack.c.h.bf16 %v3113_v11 }
 0x1f0   :  { %1623 = vmatpush.msra.mxu0 %v1483_v49  ;;  %1643 = vmatpush.msra.mxu1 %v1515_v57  ;;  %v1127_v8 = vadd.f32 %v1126_v44, %v1107_v27  ;;  %v1409_v49 = vmax.f32 %v3205_v24, 0.0  ;;  %v1538_v57 = vunpack.c.h.bf16 %v3092_v63  ;;  %v3228_v63 = vld [vmem:[#allocation8 + $0x130] sm:$0xff]  ;;  %v3246_v44 = vld [vmem:[#allocation8 + $0x1e8] sm:$0xff] }
 0x1f1   :  { %1658 = vmatpush.msra.mxu2 %v1557_v55  ;;  %v3259_v55 = vld [vmem:[#allocation8 + $0x110] sm:$0xff]  ;;  %v1599_v11 = vunpack.c.l.bf16 %v3246_v44 }
 0x1f2   :  { %1624 = vmatpush.msra.mxu0 %v1481_v31  ;;  %1644 = vmatpush.msra.mxu1 %v1513_v58  ;;  %v1504_v58 = vunpack.c.h.bf16 %v3096_v53  ;;  %v1532_v53 = vunpack.c.h.bf16 %v3115_v34  ;;  %v1530_v34 = vunpack.c.h.bf16 %v3122_v56  ;;  %v3264_v56 = vld [vmem:[#allocation8 + $0x1d8] sm:$0xff] }
 0x1f3   :  { %1659 = vmatpush.msra.mxu2 %v1555_v16  ;;  %v1526_v16 = vunpack.c.h.bf16 %v3134_v52  ;;  %v1492_v52 = vunpack.c.h.bf16 %v3138_v13  ;;  %v1488_v13 = vunpack.c.h.bf16 %v3151_v54  ;;  %v1566_v54 = vunpack.c.h.bf16 %v3182_v36 }
 0x1f4   :  { %1625 = vmatpush.msra.mxu0 %v1479_v23  ;;  %1645 = vmatpush.msra.mxu1 %v1511_v4  ;;  %v1146_v19 = vpop.f32.mrf.mxu2  ;;  %v1166_v18 = vpop.f32.mrf.mxu3  ;;  %v1553_v23 = vunpack.c.l.bf16 %v3228_v63  ;;  %v3237_v4 = vld [vmem:[#allocation8 + $0x120] sm:$0xff]  ;;  %v1510_v36 = vunpack.c.h.bf16 %v3198_v21  ;;  %v3307_v21 = vld [vmem:[#allocation8 + $0x1c8] sm:$0xff] }
 0x1f5   :  { %v1147_v37 = vadd.f32 %v1146_v19, %v1127_v8  ;;  %v1549_v8 = vunpack.c.l.bf16 %v3237_v4  ;;  %v1498_v19 = vunpack.c.h.bf16 %v3120_v46 }
 0x1f6   :  { %1626 = vmatpush.msra.mxu0 %v1477_v28  ;;  %1646 = vmatpush.msra.mxu1 %v1509_v17  ;;  %v1551_v28 = vunpack.c.l.bf16 %v3231_v33  ;;  %v1603_v17 = vunpack.c.l.bf16 %v3239_v14 }
 0x1f7   :  { %1627 = vmatmul.f32.vlgmr.msra.gmra.mxu0 %v1409_v49  ;;  %v3226_v31 = vadd.f32 %v1166_v18, %v1147_v37  ;;  %1660 = vmatpush.msra.mxu2 %v1553_v23  ;;  %v1547_v37 = vunpack.c.l.bf16 %v3251_v0  ;;  %v3267_v18 = vld [vmem:[#allocation8 + $0x108] sm:$0xff] }
 0x1f8   :  { %1711 = vmatpush.msrb.mxu1 %v1540_v9  ;;  %1691 = vmatpush.msrb.mxu0 %v1508_v59  ;;  %v1601_v9 = vunpack.c.l.bf16 %v3244_v51  ;;  %v3256_v59 = vld [vmem:[#allocation8 + $0x1e0] sm:$0xff]  ;;  %v1543_v23 = vunpack.c.l.bf16 %v3267_v18 }
 0x1f9   :  { %v1410_v27 = vmax.f32 %v3226_v31, 0.0  ;;  %1671 = vmatpush.msra.mxu3 %v1603_v17  ;;  %1661 = vmatpush.msra.mxu2 %v1551_v28  ;;  %v1597_v46 = vunpack.c.l.bf16 %v3256_v59  ;;  %v1572_v28 = vunpack.c.h.bf16 %v3155_v22  ;;  %v1570_v17 = vunpack.c.h.bf16 %v3164_v29  ;;  %v3317_v31 = vld [vmem:[#allocation8 + $0x1b8] sm:$0xff] }
 0x1fa   :  { %1712 = vmatpush.msrb.mxu1 %v1538_v57  ;;  %1692 = vmatpush.msrb.mxu0 %v1506_v43  ;;  %v1528_v57 = vunpack.c.h.bf16 %v3128_v3  ;;  %v1496_v43 = vunpack.c.h.bf16 %v3126_v6  ;;  %v1494_v3 = vunpack.c.h.bf16 %v3132_v61  ;;  %v1524_v6 = vunpack.c.h.bf16 %v3140_v20 }
 0x1fb   :  { %1647 = vmatmul.f32.vlgmr.msra.gmra.mxu1 %v1410_v27  ;;  %1672 = vmatpush.msra.mxu3 %v1601_v9  ;;  %v1520_v20 = vunpack.c.h.bf16 %v3153_v1  ;;  %v1516_v22 = vunpack.c.h.bf16 %v3171_v5  ;;  %v1484_v1 = vunpack.c.h.bf16 %v3169_v41  ;;  %v1514_v29 = vunpack.c.h.bf16 %v3180_v45 }
 0x1fc   :  { %1713 = vmatpush.msrb.mxu1 %v1536_v39  ;;  %1693 = vmatpush.msrb.mxu0 %v1504_v58  ;;  %v1545_v39 = vunpack.c.l.bf16 %v3259_v55  ;;  %v3273_v58 = vld [vmem:[#allocation8 + $0x100] sm:$0xff]  ;;  %v1480_v5 = vunpack.c.h.bf16 %v3187_v30  ;;  %v1562_v41 = vunpack.c.h.bf16 %v3200_v60  ;;  %v1478_v45 = vunpack.c.h.bf16 %v3196_v48 }
 0x1fd   :  { %1662 = vmatpush.msra.mxu2 %v1549_v8  ;;  %1673 = vmatpush.msra.mxu3 %v1599_v11  ;;  %v1541_v61 = vunpack.c.l.bf16 %v3273_v58  ;;  %v1558_v30 = vunpack.c.h.bf16 %v3213_v47  ;;  %v3309_v48 = vld [vmem:[#allocation8 + $0x1c0] sm:$0xff]  ;;  %v1556_v60 = vunpack.c.h.bf16 %v3219_v26  ;;  %v1554_v9 = vunpack.c.h.bf16 %v3228_v63  ;;  %v3331_v11 = vld [vmem:[#allocation8 + $0x198] sm:$0xff] }
 0x1fe   :  { %1714 = vmatpush.msrb.mxu1 %v1534_v38  ;;  %1694 = vmatpush.msrb.mxu0 %v1502_v10  ;;  %v1595_v38 = vunpack.c.l.bf16 %v3264_v56  ;;  %v1522_v10 = vunpack.c.h.bf16 %v3146_v40  ;;  %v1518_v40 = vunpack.c.h.bf16 %v3162_v50  ;;  %v1482_v50 = vunpack.c.h.bf16 %v3178_v35 }
 0x1ff   :  { %1663 = vmatpush.msra.mxu2 %v1547_v37  ;;  %1674 = vmatpush.msra.mxu3 %v1597_v46  ;;  %v1560_v35 = vunpack.c.h.bf16 %v3207_v2  ;;  %v1591_v2 = vunpack.c.l.bf16 %v3307_v21  ;;  %v1589_v47 = vunpack.c.l.bf16 %v3309_v48  ;;  %v1587_v24 = vunpack.c.l.bf16 %v3317_v31 }
 0x200   :  { %1715 = vmatpush.msrb.mxu1 %v1532_v53  ;;  %1695 = vmatpush.msrb.mxu0 %v1500_v42  ;;  %v1490_v53 = vunpack.c.h.bf16 %v3144_v7  ;;  %v1486_v42 = vunpack.c.h.bf16 %v3160_v62  ;;  %v1568_v7 = vunpack.c.h.bf16 %v3173_v32  ;;  %v1564_v62 = vunpack.c.h.bf16 %v3191_v15  ;;  %v3301_v15 = vld [vmem:[#allocation8 + $0x1d0] sm:$0xff] }
 0x201   :  { %1664 = vmatpush.msra.mxu2 %v1545_v39  ;;  %1675 = vmatpush.msra.mxu3 %v1595_v38  ;;  %v1512_v32 = vunpack.c.h.bf16 %v3189_v25  ;;  %v1593_v25 = vunpack.c.l.bf16 %v3301_v15  ;;  %v1550_v8 = vunpack.c.h.bf16 %v3237_v4  ;;  %v1546_v37 = vunpack.c.h.bf16 %v3259_v55 }
 0x202   :  { %1716 = vmatpush.msrb.mxu1 %v1530_v34  ;;  %1696 = vmatpush.msrb.mxu0 %v1498_v19  ;;  %v3323_v34 = vld [vmem:[#allocation8 + $0x1a8] sm:$0xff]  ;;  %v3327_v19 = vld [vmem:[#allocation8 + $0x1a0] sm:$0xff]  ;;  %v906_v4 = vperm.slane %v3109_v12, 2  ;;  %v1579_v46 = vunpack.c.l.bf16 %v3331_v11  ;;  %v1544_v39 = vunpack.c.h.bf16 %v3267_v18  ;;  %v1542_v38 = vunpack.c.h.bf16 %v3273_v58 }
 0x203   :  { %1665 = vmatpush.msra.mxu2 %v1543_v23  ;;  %1676 = vmatpush.msra.mxu3 %v1593_v25  ;;  %v1583_v63 = vunpack.c.l.bf16 %v3323_v34  ;;  %v1600_v58 = vunpack.c.h.bf16 %v3246_v44  ;;  %v1590_v44 = vunpack.c.h.bf16 %v3309_v48 }
 0x204   :  { %1717 = vmatpush.msrb.mxu1 %v1528_v57  ;;  %1697 = vmatpush.msrb.mxu0 %v1496_v43  ;;  %v1581_v57 = vunpack.c.l.bf16 %v3327_v19  ;;  %v3335_v43 = vld [vmem:[#allocation8 + $0x190] sm:$0xff] }
 0x205   :  { %1666 = vmatpush.msra.mxu2 %v1541_v61  ;;  %1677 = vmatpush.msra.mxu3 %v1591_v2 }
 0x206   :  { %1718 = vmatpush.msrb.mxu1 %v1526_v16  ;;  %1698 = vmatpush.msrb.mxu0 %v1494_v3  ;;  %v1577_v3 = vunpack.c.l.bf16 %v3335_v43 }
 0x207   :  { %1731 = vmatpush.msrb.mxu2 %v1572_v28  ;;  %1678 = vmatpush.msra.mxu3 %v1589_v47  ;;  %v1602_v28 = vunpack.c.h.bf16 %v3244_v51  ;;  %v1594_v51 = vunpack.c.h.bf16 %v3301_v15 }
 0x208   :  { %1719 = vmatpush.msrb.mxu1 %v1524_v6  ;;  %1699 = vmatpush.msrb.mxu0 %v1492_v52  ;;  %v1461_v6 = vld [vmem:[#allocation8 + $0x180] sm:$0xff] }
 0x209   :  { %1732 = vmatpush.msrb.mxu2 %v1570_v17  ;;  %1679 = vmatpush.msra.mxu3 %v1587_v24  ;;  %v1573_v52 = vunpack.c.l.bf16 %v1461_v6  ;;  %v1598_v17 = vunpack.c.h.bf16 %v3256_v59  ;;  %v1588_v59 = vunpack.c.h.bf16 %v3317_v31 }
 0x20a   :  { %1720 = vmatpush.msrb.mxu1 %v1522_v10  ;;  %1700 = vmatpush.msrb.mxu0 %v1490_v53  ;;  %v1604_v53 = vunpack.c.h.bf16 %v3239_v14 }
 0x20b   :  { %1733 = vmatpush.msrb.mxu2 %v1568_v7  ;;  %v1596_v7 = vunpack.c.h.bf16 %v3264_v56 }
 0x20c   :  { %1721 = vmatpush.msrb.mxu1 %v1520_v20  ;;  %1701 = vmatpush.msrb.mxu0 %v1488_v13 }
 0x20d   :  { %1734 = vmatpush.msrb.mxu2 %v1566_v54 }
 0x20e   :  { %1722 = vmatpush.msrb.mxu1 %v1518_v40  ;;  %1702 = vmatpush.msrb.mxu0 %v1486_v42 }
 0x20f   :  { %1735 = vmatpush.msrb.mxu2 %v1564_v62  ;;  %v1186_v16 = vpop.f32.mrf.mxu0  ;;  %v1206_v10 = vpop.f32.mrf.mxu1  ;;  %v1582_v62 = vunpack.c.h.bf16 %v3327_v19  ;;  %v2002_v19 = vld [vmem:[#allocation9 + $0x70] sm:$0xff]  }
 0x210   :  { %1723 = vmatpush.msrb.mxu1 %v1516_v22  ;;  %1703 = vmatpush.msrb.mxu0 %v1484_v1  ;;  %v1187_v55 = vadd.f32 %v1186_v16, %v906_v4  ;;  %v2001_v4 = vld [vmem:[#allocation9 + $0x68] sm:$0xff]  }
 0x211   :  { %1736 = vmatpush.msrb.mxu2 %v1562_v41 }
 0x212   :  { %1724 = vmatpush.msrb.mxu1 %v1514_v29  ;;  %1704 = vmatpush.msrb.mxu0 %v1482_v50  ;;  %v1207_v18 = vadd.f32 %v1206_v10, %v1187_v55  ;;  %v1592_v29 = vunpack.c.h.bf16 %v3307_v21  ;;  %v1584_v50 = vunpack.c.h.bf16 %v3323_v34  ;;  %v1994_v34 = vld [vmem:[#allocation9 + $0x30] sm:$0xff]  }
 0x213   :  { %1737 = vmatpush.msrb.mxu2 %v1560_v35 }
 0x214   :  { %1725 = vmatpush.msrb.mxu1 %v1512_v32  ;;  %1705 = vmatpush.msrb.mxu0 %v1480_v5  ;;  %v1580_v32 = vunpack.c.h.bf16 %v3331_v11  ;;  %v1578_v5 = vunpack.c.h.bf16 %v3335_v43  ;;  %v1952_v11 = vunpack.c.h.bf16 %v1994_v34  ;;  %v1951_v43 = vunpack.c.l.bf16 %v1994_v34 }
 0x215   :  { %1738 = vmatpush.msrb.mxu2 %v1558_v30 }
 0x216   :  { %1726 = vmatpush.msrb.mxu1 %v1510_v36  ;;  %1706 = vmatpush.msrb.mxu0 %v1478_v45  ;;  %v1226_v61 = vpop.f32.mrf.mxu2  ;;  %v1246_v13 = vpop.f32.mrf.mxu3  ;;  %v1574_v36 = vunpack.c.h.bf16 %v1461_v6  ;;  %v907_v45 = vperm.slane %v3109_v12, 3  ;;  %v1979_v6 = vunpack.c.l.bf16 %v2001_v4 }
 0x217   :  { %1727 = vmatmul.f32.vlgmr.msrb.gmra.mxu1 %v1410_v27  ;;  %1707 = vmatmul.f32.vlgmr.msrb.gmra.mxu0 %v1409_v49  ;;  %v1552_v27 = vunpack.c.h.bf16 %v3231_v33  ;;  %v3321_v49 = vld [vmem:[#allocation8 + $0x1b0] sm:$0xff]  ;;  %v1548_v33 = vunpack.c.h.bf16 %v3251_v0  ;;  %v1462_v0 = vld [vmem:[#allocation8 + $0x188] sm:$0xff]  ;;  %v1227_v20 = vadd.f32 %v1226_v61, %v1207_v18  ;;  %v1999_v61 = vld [vmem:[#allocation9 + $0x58] sm:$0xff]  }
 0x218   :  { %1739 = vmatpush.msrb.mxu2 %v1556_v60  ;;  %v1585_v26 = vunpack.c.l.bf16 %v3321_v49  ;;  %v1575_v23 = vunpack.c.l.bf16 %v1462_v0  ;;  %v1586_v56 = vunpack.c.h.bf16 %v3321_v49  ;;  %v1576_v41 = vunpack.c.h.bf16 %v1462_v0  ;;  %v1995_v49 = vld [vmem:[#allocation9 + $0x38] sm:$0xff]  }
 0x219   :  { %v1247_v40 = vadd.f32 %v1246_v13, %v1227_v20  ;;  %v1955_v12 = vunpack.c.l.bf16 %v1995_v49  ;;  %v1980_v0 = vunpack.c.h.bf16 %v2001_v4  ;;  %v1972_v20 = vunpack.c.h.bf16 %v1999_v61 }
 0x21a   :  { %1740 = vmatpush.msrb.mxu2 %v1554_v9  ;;  %1680 = vmatpush.msra.mxu3 %v1585_v26  ;;  %v1956_v26 = vunpack.c.h.bf16 %v1995_v49 }
 0x21c   :  { %1741 = vmatpush.msrb.mxu2 %v1552_v27  ;;  %1681 = vmatpush.msra.mxu3 %v1583_v63 }
 0x21d   :  { %1841 = vmatpush.msra.mxu0 %v1956_v26 }
 0x21e   :  { %1742 = vmatpush.msrb.mxu2 %v1550_v8  ;;  %1682 = vmatpush.msra.mxu3 %v1581_v57  ;;  %v2003_v8 = vld [vmem:[#allocation9 + $0x78] sm:$0xff]   ;;  %v1993_v57 = vld [vmem:[#allocation9 + $0x28] sm:$0xff]  }
 0x21f   :  { %v1988_v63 = vunpack.c.h.bf16 %v2003_v8  ;;  %1842 = vmatpush.msra.mxu0 %v1955_v12  ;;  %v1948_v16 = vunpack.c.h.bf16 %v1993_v57 }
 0x220   :  { %1743 = vmatpush.msrb.mxu2 %v1548_v33  ;;  %1683 = vmatpush.msra.mxu3 %v1579_v46  ;;  %v1987_v33 = vunpack.c.l.bf16 %v2003_v8  ;;  %v1983_v46 = vunpack.c.l.bf16 %v2002_v19 }
 0x221   :  { %1861 = vmatpush.msra.mxu1 %v1988_v63  ;;  %1843 = vmatpush.msra.mxu0 %v1952_v11 }
 0x222   :  { %1744 = vmatpush.msrb.mxu2 %v1546_v37  ;;  %1684 = vmatpush.msra.mxu3 %v1577_v3  ;;  %v1984_v37 = vunpack.c.h.bf16 %v2002_v19  ;;  %v1947_v3 = vunpack.c.l.bf16 %v1993_v57  ;;  %v2021_v19 = vld [vmem:[%s3375_s7] ss:$0 sm:$0xff]  ;;  %s2177_s7 = smov [#allocation11]  }
 0x223   :  { %1862 = vmatpush.msra.mxu1 %v1987_v33  ;;  %1844 = vmatpush.msra.mxu0 %v1951_v43  ;;  %s1911_s12 = sshll.u32 %s2177_s7, 4  ;;  %s1912_s12 = int_to_ptr.vmem [resolvable:$true] %s1911_s12 }
 0x224   :  { %1745 = vmatpush.msrb.mxu2 %v1544_v39  ;;  %1685 = vmatpush.msra.mxu3 %v1575_v23  ;;  %v1992_v39 = vld [vmem:[#allocation9 + $0x20] sm:$0xff]   ;;  %v1991_v23 = vld [vmem:[#allocation9 + $0x18] sm:$0xff]  }
 0x225   :  { %1863 = vmatpush.msra.mxu1 %v1984_v37  ;;  %1845 = vmatpush.msra.mxu0 %v1948_v16  ;;  %v1944_v55 = vunpack.c.h.bf16 %v1992_v39  ;;  %v1943_v10 = vunpack.c.l.bf16 %v1992_v39  ;;  %v1940_v18 = vunpack.c.h.bf16 %v1991_v23 }
 0x226   :  { %1746 = vmatpush.msrb.mxu2 %v1542_v38  ;;  %1686 = vmatpush.msra.mxu3 %v1573_v52  ;;  %v2000_v38 = vld [vmem:[#allocation9 + $0x60] sm:$0xff]  }
 0x227   :  { %1864 = vmatpush.msra.mxu1 %v1983_v46  ;;  %v1976_v52 = vunpack.c.h.bf16 %v2000_v38  ;;  %1846 = vmatpush.msra.mxu0 %v1947_v3 }
 0x228   :  { %1751 = vmatpush.msrb.mxu3 %v1604_v53  ;;  %v1975_v53 = vunpack.c.l.bf16 %v2000_v38 }
 0x229   :  { %1865 = vmatpush.msra.mxu1 %v1980_v0  ;;  %1847 = vmatpush.msra.mxu0 %v1944_v55 }
 0x22a   :  { %1752 = vmatpush.msrb.mxu3 %v1602_v28  ;;  %v1990_v28 = vld [vmem:[#allocation9 + $0x10] sm:$0xff]  }
 0x22b   :  { %1866 = vmatpush.msra.mxu1 %v1979_v6  ;;  %1848 = vmatpush.msra.mxu0 %v1943_v10  ;;  %v1936_v13 = vunpack.c.h.bf16 %v1990_v28 }
 0x22c   :  { %1753 = vmatpush.msrb.mxu3 %v1600_v58  ;;  %v1939_v58 = vunpack.c.l.bf16 %v1991_v23 }
 0x22d   :  { %1867 = vmatpush.msra.mxu1 %v1976_v52  ;;  %1849 = vmatpush.msra.mxu0 %v1940_v18 }
 0x22e   :  { %1754 = vmatpush.msrb.mxu3 %v1598_v17  ;;  %v1989_v17 = vld [vmem:[#allocation9 + $0x8] sm:$0xff]  }
 0x22f   :  { %1868 = vmatpush.msra.mxu1 %v1975_v53  ;;  %1850 = vmatpush.msra.mxu0 %v1939_v58 }
 0x230   :  { %1755 = vmatpush.msrb.mxu3 %v1596_v7  ;;  %v1931_v7 = vunpack.c.l.bf16 %v1989_v17 }
 0x231   :  { %v1266_v42 = vpop.f32.mrf.mxu0  ;;  %v1286_v14 = vpop.f32.mrf.mxu1  ;;  %1869 = vmatpush.msra.mxu1 %v1972_v20  ;;  %1851 = vmatpush.msra.mxu0 %v1936_v13 }
 0x232   :  { %v1267_v22 = vadd.f32 %v1266_v42, %v1247_v40  ;;  %1756 = vmatpush.msrb.mxu3 %v1594_v51  ;;  %v1935_v40 = vunpack.c.l.bf16 %v1990_v28  ;;  %v1932_v42 = vunpack.c.h.bf16 %v1989_v17 }
 0x234   :  { %v1287_v1 = vadd.f32 %v1286_v14, %v1267_v22  ;;  %1757 = vmatpush.msrb.mxu3 %v1592_v29  ;;  %1852 = vmatpush.msra.mxu0 %v1935_v40  ;;  %v1971_v22 = vunpack.c.l.bf16 %v1999_v61  ;;  %v1926_v14 = vld [vmem:[#allocation9] sm:$0xff]  }
 0x235   :  { %v1928_v51 = vunpack.c.h.bf16 %v1926_v14  ;;  %v1927_v29 = vunpack.c.l.bf16 %v1926_v14 }
 0x236   :  { %v1411_v54 = vmax.f32 %v1287_v1, 0.0  ;;  %1758 = vmatpush.msrb.mxu3 %v1590_v44  ;;  %1853 = vmatpush.msra.mxu0 %v1932_v42  ;;  %v1998_v1 = vld [vmem:[#allocation9 + $0x50] sm:$0xff]  }
 0x237   :  { %1870 = vmatpush.msra.mxu1 %v1971_v22  ;;  %v1967_v44 = vunpack.c.l.bf16 %v1998_v1 }
 0x238   :  { %1667 = vmatmul.f32.vlgmr.msra.gmra.mxu2 %v1411_v54  ;;  %1759 = vmatpush.msrb.mxu3 %v1588_v59  ;;  %v1306_v35 = vpop.f32.mrf.mxu2  ;;  %v1326_v30 = vpop.f32.mrf.mxu3  ;;  %v1997_v59 = vld [vmem:[#allocation9 + $0x48] sm:$0xff]  }
 0x239   :  { %v1307_v15 = vadd.f32 %v1306_v35, %v907_v45  ;;  %1854 = vmatpush.msra.mxu0 %v1931_v7 }
 0x23a   :  { %1760 = vmatpush.msrb.mxu3 %v1586_v56  ;;  %v1964_v56 = vunpack.c.h.bf16 %v1997_v59 }
 0x23b   :  { %v1327_v25 = vadd.f32 %v1326_v30, %v1307_v15  ;;  %1855 = vmatpush.msra.mxu0 %v1928_v51 }
 0x23c   :  { %1761 = vmatpush.msrb.mxu3 %v1584_v50  ;;  %v1963_v50 = vunpack.c.l.bf16 %v1997_v59 }
 0x23d   :  { %1856 = vmatpush.msra.mxu0 %v1927_v29 }
 0x23e   :  { %1762 = vmatpush.msrb.mxu3 %v1582_v62  ;;  %v1996_v62 = vld [vmem:[#allocation9 + $0x40] sm:$0xff]  }
 0x240   :  { %1747 = vmatmul.f32.vlgmr.msrb.gmra.mxu2 %v1411_v54  ;;  %1763 = vmatpush.msrb.mxu3 %v1580_v32  ;;  %v1968_v54 = vunpack.c.h.bf16 %v1998_v1  ;;  %v1960_v32 = vunpack.c.h.bf16 %v1996_v62 }
 0x242   :  { %1764 = vmatpush.msrb.mxu3 %v1578_v5  ;;  %1871 = vmatpush.msra.mxu1 %v1968_v54  ;;  %v1959_v5 = vunpack.c.l.bf16 %v1996_v62 }
 0x244   :  { %1765 = vmatpush.msrb.mxu3 %v1576_v41  ;;  %1872 = vmatpush.msra.mxu1 %v1967_v44  ;;  %v1605_v41 = vld [vmem:[%s3373_s5] sm:$0x3] }
 0x245   :  { %v1607_v45 = vperm.slane %v1605_v41, 0 }
 0x246   :  { %1766 = vmatpush.msrb.mxu3 %v1574_v36  ;;  %1873 = vmatpush.msra.mxu1 %v1964_v56 }
 0x248   :  { %1874 = vmatpush.msra.mxu1 %v1963_v50 }
 0x24a   :  { %1875 = vmatpush.msra.mxu1 %v1960_v32 }
 0x24c   :  { %1876 = vmatpush.msra.mxu1 %v1959_v5 }
 0x253   :  { %v1346_v21 = vpop.f32.mrf.mxu0  ;;  %v1366_v60 = vpop.f32.mrf.mxu1 }
 0x254   :  { %v1347_v48 = vadd.f32 %v1346_v21, %v1327_v25  ;;  %v1608_v21 = vperm.slane %v1605_v41, 1 }
 0x256   :  { %v1367_v2 = vadd.f32 %v1366_v60, %v1347_v48 }
 0x25a   :  { %v1386_v47 = vpop.f32.mrf.mxu2  ;;  %v1406_v31 = vpop.f32.mrf.mxu3 }
 0x25b   :  { %v1387_v9 = vadd.f32 %v1386_v47, %v1367_v2 }
 0x25d   :  { %v1407_v27 = vadd.f32 %v1406_v31, %v1387_v9 }
 0x25f   :  { %v1412_v24 = vmax.f32 %v1407_v27, 0.0 }
 0x261   :  { %1687 = vmatmul.f32.vlgmr.msra.gmra.mxu3 %v1412_v24 }
 0x269   :  { %1767 = vmatmul.f32.vlgmr.msrb.gmra.mxu3 %v1412_v24 }
 0x274   :  { %v1628_v36 = vpop.f32.mrf.mxu0 }
 0x275   :  { %v1629_v30 = vadd.f32 %v1628_v36, %v1607_v45 }
 0x278   :  { %v1648_v35 = vpop.f32.mrf.mxu1 }
 0x279   :  { %v1649_v25 = vadd.f32 %v1648_v35, %v1629_v30 }
 0x294   :  { %v1708_v48 = vpop.f32.mrf.mxu0  ;;  %v1728_v27 = vpop.f32.mrf.mxu1 }
 0x295   :  { %v1709_v47 = vadd.f32 %v1708_v48, %v1608_v21 }
 0x297   :  { %v1729_v49 = vadd.f32 %v1728_v27, %v1709_v47 }
 0x2bb   :  { %v1668_v15 = vpop.f32.mrf.mxu2 }
 0x2bc   :  { %v1669_v60 = vadd.f32 %v1668_v15, %v1649_v25 }
 0x2c3   :  { %v1748_v24 = vpop.f32.mrf.mxu2 }
 0x2c4   :  { %v1749_v34 = vadd.f32 %v1748_v24, %v1729_v49 }
 0x2e4   :  { %v1688_v2 = vpop.f32.mrf.mxu3 }
 0x2e5   :  { %v1689_v9 = vadd.f32 %v1688_v2, %v1669_v60 }
 0x2e7   :  { %v1771_v31 = vmax.f32 %v1689_v9, 0.0 }
 0x2e9   :  { %1857 = vmatmul.f32.vlgmr.msra.gmra.mxu0 %v1771_v31 }
 0x2ec   :  { %v1768_v26 = vpop.f32.mrf.mxu3 }
 0x2ed   :  { %v1769_v12 = vadd.f32 %v1768_v26, %v1749_v34 }
 0x2ef   :  { %v1772_v8 = vmax.f32 %v1769_v12, 0.0 }
 0x2f1   :  { %1877 = vmatmul.f32.vlgmr.msra.gmra.mxu1 %v1772_v8 }
 0x366   :  { %v1858_v63 = vpop.f32.mrf.mxu0 }
 0x367   :  { %v1859_v33 = vadd.f32 %v2021_v19, %v1858_v63 }
 0x36e   :  { %v1878_v11 = vpop.f32.mrf.mxu1 }
 0x36f   :  { %v1879_v57 = vadd.f32 %v1878_v11, %v1859_v33 }
 0x371   :  { %v1881_v37 = vsel %vm205_vm0, %v1879_v57, -inf }
 0x372   :  { %1882 = vmax.xlane.f32.xlu1 %v1881_v37 }
 0x3e5   :  { %v1883_v43 = vpop.xlane.xlu1 %1882 }
 0x3e6   :  { %v1884_v4 = vsub.f32 %v1879_v57, %v1883_v43 }
 0x3e8   :  { %v1885_v46 = vmul.f32 1.442695, %v1884_v4 }
 0x3ea   :  { %2026 = vpow2.f32 %v1885_v46 }
 0x3f0   :  { %v2027_v16 = vpop.eup %2026 }
 0x3f1   :  { %v1887_v39 = vsel %vm205_vm0, %v2027_v16, 0.0 }
 0x3f2   :  { %1888 = vadd.xlane.f32.xlu1 %v1887_v39 }
 0x465   :  { %v1889_v0 = vpop.xlane.xlu1 %1888 }
 0x466   :  { %2028 = vrcp.f32 %v1889_v0  ;;  %v1901_v55 = vand.u32 2147483648, %v1889_v0  ;;  %v1899_v52 = vand.u32 2147483647, %v1889_v0  ;;  %vm1895_vm14 = vweird.f32 %v1889_v0 }
 0x468   :  { %v1902_v61 = vor.u32 1.1754944e-38, %v1901_v55  ;;  %vm1900_vm0 = vcmp.eq.f32.partialorder %v1899_v52, 8.507059e+37 }
 0x46c   :  { %v2029_v3 = vpop.eup %2028 }
 0x46d   :  { %v1891_v38 = vmul.f32 %v2029_v3, %v1889_v0  ;;  %vm1896_vm13 = vweird.f32 %v2029_v3 }
 0x46e   :  { %vm1897_vm15 = vmor %vm1895_vm14, %vm1896_vm13 }
 0x46f   :  { %v1892_v6 = vsub.f32 1.0, %v1891_v38 }
 0x471   :  { %v1893_v23 = vmul.f32 %v2029_v3, %v1892_v6 }
 0x473   :  { %v1894_v10 = vadd.f32 %v2029_v3, %v1893_v23 }
 0x475   :  { %v1898_v53 = vsel %vm1897_vm15, %v2029_v3, %v1894_v10 }
 0x476   :  { %v1903_v18 = vsel %vm1900_vm0, %v1902_v61, %v1898_v53 }
 0x477   :  { %v1904_v28 = vmul.f32 %v2027_v16, %v1903_v18 }
 0x479   :  { %1905 = vst [vmem:[#allocation11] sm:$0x3] %v1904_v28 }
 0x47a   :  { %1916 = dma.vmem_to_hbm [thread:$0]  %s1912_s12, 32, %s1914_s15, [#allocation5]  }
 0x47b   :  { %2160 = dma.done.wait [#allocation5], 32  }
 0x47c   :  { %2161 = vsyncadd [#allocation5], 4294967264 }
 0x47d   :  { %1921 = vsyncpa [#allocation4], 1 }
 0x47e   :  { %1922 = vsyncpa [#allocation7], 1 }
 0x47f   :  { %1923 = vsyncpa [#allocation10], 1 }
 0x480   :  { %1924 = vsyncpa [#allocation5], 1 }

</bundles_post_ra>
